<compile_context>
chip_gen: v6e
topology: v6e:2x2x1
jax: 0.10.0
libtpu: 0.0.40
codegen_flags: <defaults>
</compile_context>

<pallas_src>
import functools
import math

import jax
import jax.numpy as jnp
from jax import lax
from jax.experimental import pallas as pl
from jax.experimental.pallas import tpu as pltpu

_SQRT_HALF = 0.7071067811865476
_LN_EPS = 1e-5


def _erf(x):
    # Abramowitz & Stegun 7.1.26, |error| <= 1.5e-7; only uses exp (safe Mosaic lowering).
    a1, a2, a3, a4, a5 = 0.254829592, -0.284496736, 1.421413741, -1.453152027, 1.061405429
    p = 0.3275911
    sign = jnp.where(x < 0.0, -1.0, 1.0)
    z = jnp.abs(x)
    t = 1.0 / (1.0 + p * z)
    poly = ((((a5 * t + a4) * t + a3) * t + a2) * t + a1) * t
    return sign * (1.0 - poly * jnp.exp(-z * z))


def _gelu(x):
    return 0.5 * x * (1.0 + _erf(x * _SQRT_HALF))


def _layernorm(x, gamma, beta, eps):
    mu = jnp.mean(x, axis=-1, keepdims=True)
    var = jnp.mean((x - mu) * (x - mu), axis=-1, keepdims=True)
    return (x - mu) * lax.rsqrt(var + eps) * gamma + beta


def encoder_layer_kernel(
    x_ref,
    wqkv_ref, bqkv_ref,
    wo_ref, bo_ref,
    e_t_ref,
    ln1_g_ref, ln1_b_ref,
    w1_ref, b1_ref, w2_ref, b2_ref,
    ln2_g_ref, ln2_b_ref,
    out_ref,
    ctx_ref,
    *, num_heads, head_dim, seq_len, tile_b, ln_eps):
    f32 = jnp.float32
    S, hd, H, TB = seq_len, head_dim, num_heads, tile_b
    D = H * hd
    inv_sqrt_hd = 1.0 / math.sqrt(hd)
    cdt = x_ref.dtype                                    # matmul operand dtype (f32 or bf16)

    xc = x_ref[...]                                      # (rows, D) compute dtype
    x32 = xc.astype(f32)

    # --- fused QKV projection: one (rows, D) @ (D, 3D) MXU op, f32 accumulation ---
    qkv = jnp.dot(xc, wqkv_ref[...], preferred_element_type=f32) + bqkv_ref[...]

    # --- relative-position skew masks, hoisted out of the (batch, head) loops ---
    # S_rel[i, j] = qe[i, j - i + S - 1] for j <= i, else 0   (Music-Transformer skew + mask).
    row = lax.broadcasted_iota(jnp.int32, (S, S), 0)
    col = lax.broadcasted_iota(jnp.int32, (S, S), 1)
    rel = col - row + (S - 1)
    diag = [(rel == r).astype(f32) for r in range(S)]
    # TODO(synk): for long S replace this O(S) diagonal scatter with a per-sublane strided
    # pltpu.roll (XLU slot) + a single lower-triangular mask.

    e_t = e_t_ref[...]                                   # (hd, S) = e_sub^T, compute dtype

    # --- attention: scores / softmax / context stay per (sequence, head) ---
    # TODO(synk): for large TILE_B * num_heads, batch these score/context einsums over the
    # tile's batch dimension instead of static unrolling.
    for b in range(TB):
        r0 = b * S
        for h in range(H):
            c0 = h * hd
            qh = qkv[r0:r0 + S, c0:c0 + hd].astype(cdt)                 # (S, hd)
            kh = qkv[r0:r0 + S, D + c0:D + c0 + hd].astype(cdt)
            vh = qkv[r0:r0 + S, 2 * D + c0:2 * D + c0 + hd].astype(cdt)

            qe = jnp.dot(qh, e_t, preferred_element_type=f32)           # (S, S): qe[i,r]=q_i.e_r
            s_rel = diag[0] * qe[:, 0:1]
            for r in range(1, S):
                s_rel = s_rel + diag[r] * qe[:, r:r + 1]

            scores = lax.dot_general(qh, kh, (((1,), (1,)), ((), ())),
                                     preferred_element_type=f32) * inv_sqrt_hd
            # TODO(synk): optional attention `mask` (masked_fill -1e9) not wired; mask=None only.
            logits = scores + s_rel                      # matches torch: only QK^T is scaled
            m = jnp.max(logits, axis=-1, keepdims=True)
            p = jnp.exp(logits - m)
            attn = p * pl.reciprocal(jnp.sum(p, axis=-1, keepdims=True), approx=True)
            ctx = jnp.dot(attn.astype(cdt), vh, preferred_element_type=f32)     # (S, hd)
            ctx_ref[r0:r0 + S, c0:c0 + hd] = ctx         # stage head context (static offsets)

    # --- single fused output projection over the whole row block ---
    attn_out = jnp.dot(ctx_ref[...].astype(cdt), wo_ref[...],
                       preferred_element_type=f32) + bo_ref[...]        # dropout1: identity
    x1 = _layernorm(x32 + attn_out, ln1_g_ref[...], ln1_b_ref[...], ln_eps)

    # --- feed-forward (exact-erf GELU), f32 epilogue ---
    hidden = _gelu(jnp.dot(x1.astype(cdt), w1_ref[...], preferred_element_type=f32)
                   + b1_ref[...])
    ff = jnp.dot(hidden.astype(cdt), w2_ref[...], preferred_element_type=f32) + b2_ref[...]
    out = _layernorm(x1 + ff, ln2_g_ref[...], ln2_b_ref[...], ln_eps)   # dropout2: identity

    out_ref[...] = out.astype(out_ref.dtype)


def prepare_encoder_layer_params(params, *, num_heads, max_seq_len, seq_len,
                                 compute_dtype=jnp.float32):
    """One-time host-side re-layout of PyTorch-layout weights (nn.Linear weight = (out, in))
    into the lane-dense (in, out) layouts the kernel consumes.  Cache / reuse the result."""
    D = params["wq"].shape[1]
    d_ff = params["w1"].shape[0]
    f32 = jnp.float32
    cdt = compute_dtype

    wqkv = jnp.concatenate([jnp.transpose(params["wq"]),
                            jnp.transpose(params["wk"]),
                            jnp.transpose(params["wv"])], axis=1).astype(cdt)        # (D, 3D)
    bqkv = jnp.concatenate([params["bq"], params["bk"], params["bv"]]
                           ).reshape(1, 3 * D).astype(f32)
    wo = jnp.transpose(params["wo"]).astype(cdt)                                     # (D, D)
    bo = params["bo"].reshape(1, D).astype(f32)
    e_sub = params["e_r"][max(0, max_seq_len - seq_len):, :]                         # (S, hd)
    e_t = jnp.transpose(e_sub).astype(cdt)                                           # (hd, S)
    w1 = jnp.transpose(params["w1"]).astype(cdt)                                     # (D, d_ff)
    b1 = params["b1"].reshape(1, d_ff).astype(f32)
    w2 = jnp.transpose(params["w2"]).astype(cdt)                                     # (d_ff, D)
    b2 = params["b2"].reshape(1, D).astype(f32)

    return dict(
        num_heads=num_heads, seq_len=seq_len, d_model=D, d_ff=d_ff,
        wqkv=wqkv, bqkv=bqkv, wo=wo, bo=bo, e_t=e_t,
        ln1_g=params["ln1_g"].reshape(1, D).astype(f32),
        ln1_b=params["ln1_b"].reshape(1, D).astype(f32),
        w1=w1, b1=b1, w2=w2, b2=b2,
        ln2_g=params["ln2_g"].reshape(1, D).astype(f32),
        ln2_b=params["ln2_b"].reshape(1, D).astype(f32),
    )


def _pick_tile_b(batch, seq, target_rows=256):
    # Largest divisor of `batch` whose row block (tile_b * seq) stays <= target_rows.
    # target_rows=256 matches the v6e/v7x MXU tile (128 is already enough on v5e).  On v7x one
    # may prefer a smaller tile_b so the grid keeps >= 2 parallel steps for its 2 TensorCores.
    best = 1
    for d in range(1, batch + 1):
        if batch % d == 0 and d * seq <= max(seq, target_rows):
            best = d
    return best


def encoder_layer_forward(x, prep, *, mask=None, tile_b=None):
    """x: (B, S, d_model).  prep: output of prepare_encoder_layer_params (same seq_len)."""
    if mask is not None:
        # TODO(synk): optional attention mask path (masked_fill -1e9) not implemented.
        raise NotImplementedError("mask is not supported by this kernel")
    B, S, D = x.shape
    H = prep["num_heads"]
    hd = D // H
    d_ff = prep["d_ff"]
    assert S == prep["seq_len"] and D == prep["d_model"] and D % H == 0
    cdt = prep["wqkv"].dtype

    if tile_b is None:
        tile_b = _pick_tile_b(B, S)
    if (tile_b * S) % 8 != 0:          # keep the row block (8, 128)-tileable
        tile_b = B
    assert B % tile_b == 0
    rows = tile_b * S
    grid = (B // tile_b,)

    x2d = x.astype(cdt).reshape(B * S, D)   # flatten batch*seq -> rows (all dense ops are
                                            # position-wise, so one big M dimension is legal)

    consts = (prep["wqkv"], prep["bqkv"], prep["wo"], prep["bo"], prep["e_t"],
              prep["ln1_g"], prep["ln1_b"], prep["w1"], prep["b1"],
              prep["w2"], prep["b2"], prep["ln2_g"], prep["ln2_b"])

    def const_spec(a):  # full-array block, constant index_map -> fetched once, kept resident
        # TODO(synk): at real model sizes on v7x (64 MiB VMEM) add pipeline_mode=pl.Buffered(1)
        # here (constants never change) and tile d_ff instead of keeping the whole FFN resident.
        return pl.BlockSpec(a.shape, lambda i: (0, 0))

    in_specs = [pl.BlockSpec((rows, D), lambda i: (i, 0))] + [const_spec(a) for a in consts]
    # TODO(synk): optionally pack the output to (B, S*D) for an unmasked lane-dense store if
    # profiling shows the store slot binding (secondary at these sizes).
    out_specs = pl.BlockSpec((rows, D), lambda i: (i, 0))

    weight_bytes = sum(int(a.size) * a.dtype.itemsize for a in consts)
    act_bytes = 4 * rows * (2 * D + 3 * D + d_ff + D)             # rough f32 working set
    vmem_limit = int(min(100 * 2 ** 20, max(32 * 2 ** 20, 4 * (weight_bytes + act_bytes))))

    flops = (2 * B * S * D * 3 * D                                # fused QKV projection
             + B * H * 3 * 2 * S * S * hd                         # qe, scores, context
             + 2 * B * S * D * D                                  # output projection
             + 2 * 2 * B * S * D * d_ff)                          # FFN
    transcendentals = B * H * S * S + B * S * d_ff + 4 * B * S
    bytes_accessed = 4 * 2 * B * S * D + weight_bytes

    kernel = functools.partial(encoder_layer_kernel, num_heads=H, head_dim=hd,
                               seq_len=S, tile_b=tile_b, ln_eps=_LN_EPS)

    out2d = pl.pallas_call(
        kernel,
        out_shape=jax.ShapeDtypeStruct((B * S, D), jnp.float32),
        grid_spec=pltpu.PrefetchScalarGridSpec(
            num_scalar_prefetch=0,
            grid=grid,
            in_specs=in_specs,
            out_specs=out_specs,
            scratch_shapes=[pltpu.VMEM((rows, D), jnp.float32)],  # staged per-head context
        ),
        compiler_params=pltpu.CompilerParams(
            dimension_semantics=("parallel",),
            vmem_limit_bytes=vmem_limit,
        ),
        cost_estimate=pl.CostEstimate(flops=flops, transcendentals=transcendentals,
                                      bytes_accessed=bytes_accessed),
    )(x2d, *consts)
    return out2d.reshape(B, S, D)


def _reference(x, params, *, num_heads, max_seq_len, ln_eps=_LN_EPS):
    """Pure-JAX mirror of the PyTorch EncoderLayer forward (eval mode, mask=None)."""
    B, S, D = x.shape
    hd = D // num_heads

    def linear(t, w, b):                      # torch nn.Linear layout (out, in)
        return t @ jnp.transpose(w) + b

    def split_heads(t):
        return jnp.transpose(t.reshape(B, S, num_heads, hd), (0, 2, 1, 3))

    q = split_heads(linear(x, params["wq"], params["bq"]))
    k = split_heads(linear(x, params["wk"], params["bk"]))
    v = split_heads(linear(x, params["wv"], params["bv"]))

    e_sub = params["e_r"][max(0, max_seq_len - S):, :]
    qe = jnp.einsum("bhqd,kd->bhqk", q, e_sub)
    qi = jnp.arange(S)[:, None]
    ri = jnp.arange(S)[None, :]
    pos_mask = (qi + ri >= S - 1).astype(qe.dtype)       # assumed utils.mask_relative_position
    qe = qe * pos_mask[None, None]
    s_rel = jnp.pad(qe, ((0, 0), (0, 0), (0, 0), (1, 0)))          # exact PyTorch skew()
    s_rel = s_rel.reshape(B, num_heads, S + 1, S)[:, :, 1:, :]

    scores = jnp.einsum("bhqd,bhkd->bhqk", q, k) / math.sqrt(hd)
    attn = jax.nn.softmax(scores + s_rel, axis=-1)
    ctx = jnp.einsum("bhqk,bhkd->bhqd", attn, v)
    ctx = jnp.transpose(ctx, (0, 2, 1, 3)).reshape(B, S, D)
    attn_out = linear(ctx, params["wo"], params["bo"])

    def layernorm(t, g, b):
        mu = jnp.mean(t, axis=-1, keepdims=True)
        var = jnp.mean((t - mu) ** 2, axis=-1, keepdims=True)
        return (t - mu) / jnp.sqrt(var + ln_eps) * g + b

    x1 = layernorm(x + attn_out, params["ln1_g"], params["ln1_b"])
    ff = linear(jax.nn.gelu(linear(x1, params["w1"], params["b1"]), approximate=False),
                params["w2"], params["b2"])
    return layernorm(x1 + ff, params["ln2_g"], params["ln2_b"])


if __name__ == "__main__":
    batch, seq = 2, 8
    d_model, num_heads, d_ff = 64, 4, 128
    max_seq_len = 16
    head_dim = d_model // num_heads

    key = jax.random.PRNGKey(0)
    keys = jax.random.split(key, 16)

    def linear_init(kw, kb, fan_out, fan_in):
        bound = 1.0 / math.sqrt(fan_in)
        w = jax.random.uniform(kw, (fan_out, fan_in), jnp.float32, -bound, bound)
        b = jax.random.uniform(kb, (fan_out,), jnp.float32, -bound, bound)
        return w, b

    wq, bq = linear_init(keys[0], keys[1], d_model, d_model)
    wk, bk = linear_init(keys[2], keys[3], d_model, d_model)
    wv, bv = linear_init(keys[4], keys[5], d_model, d_model)
    wo, bo = linear_init(keys[6], keys[7], d_model, d_model)
    w1, b1 = linear_init(keys[8], keys[9], d_ff, d_model)
    w2, b2 = linear_init(keys[10], keys[11], d_model, d_ff)
    e_r = jax.random.normal(keys[12], (max_seq_len, head_dim), jnp.float32)
    x = jax.random.normal(keys[13], (batch, seq, d_model), jnp.float32)

    params = dict(
        wq=wq, bq=bq, wk=wk, bk=bk, wv=wv, bv=bv, wo=wo, bo=bo,
        w1=w1, b1=b1, w2=w2, b2=b2, e_r=e_r,
        ln1_g=jnp.ones((d_model,), jnp.float32), ln1_b=jnp.zeros((d_model,), jnp.float32),
        ln2_g=jnp.ones((d_model,), jnp.float32), ln2_b=jnp.zeros((d_model,), jnp.float32),
    )

    with jax.default_matmul_precision("highest"):
        ref = _reference(x, params, num_heads=num_heads, max_seq_len=max_seq_len)
    ref = jax.block_until_ready(ref)

    # f32 operand path: strict check against the PyTorch-equivalent reference.
    prep32 = prepare_encoder_layer_params(params, num_heads=num_heads,
                                          max_seq_len=max_seq_len, seq_len=seq,
                                          compute_dtype=jnp.float32)
    out = jax.block_until_ready(encoder_layer_forward(x, prep32))
    assert out.shape == (batch, seq, d_model)
    assert bool(jnp.all(jnp.isfinite(out)))
    assert jnp.allclose(out, ref, atol=2e-2, rtol=2e-2), float(jnp.max(jnp.abs(out - ref)))

    # bf16 operand / f32 accumulation path (production dtype): looser tolerance.
    prep16 = prepare_encoder_layer_params(params, num_heads=num_heads,
                                          max_seq_len=max_seq_len, seq_len=seq,
                                          compute_dtype=jnp.bfloat16)
    out_bf16 = jax.block_until_ready(encoder_layer_forward(x, prep16))
    assert bool(jnp.all(jnp.isfinite(out_bf16)))
    assert jnp.allclose(out_bf16, ref, atol=1e-1, rtol=1e-1), \
        float(jnp.max(jnp.abs(out_bf16 - ref)))

    print("KERNEL_OK")
</pallas_src>

<mosaic_0001>
module attributes {stable_mosaic.version = 11 : i64} {
  func.func @encoder_layer_kernel(%arg0: i32, %arg1: memref<16x64xf32, #tpu.memory_space<vmem>>, %arg2: memref<64x192xf32, #tpu.memory_space<vmem>>, %arg3: memref<1x192xf32, #tpu.memory_space<vmem>>, %arg4: memref<64x64xf32, #tpu.memory_space<vmem>>, %arg5: memref<1x64xf32, #tpu.memory_space<vmem>>, %arg6: memref<16x8xf32, #tpu.memory_space<vmem>>, %arg7: memref<1x64xf32, #tpu.memory_space<vmem>>, %arg8: memref<1x64xf32, #tpu.memory_space<vmem>>, %arg9: memref<64x128xf32, #tpu.memory_space<vmem>>, %arg10: memref<1x128xf32, #tpu.memory_space<vmem>>, %arg11: memref<128x64xf32, #tpu.memory_space<vmem>>, %arg12: memref<1x64xf32, #tpu.memory_space<vmem>>, %arg13: memref<1x64xf32, #tpu.memory_space<vmem>>, %arg14: memref<1x64xf32, #tpu.memory_space<vmem>>, %arg15: memref<16x64xf32, #tpu.memory_space<vmem>>, %arg16: memref<16x64xf32, #tpu.memory_space<vmem>>) attributes {dimension_semantics = [#tpu.dimension_semantics<parallel>], iteration_bounds = array<i64: 1>, scalar_prefetch = 0 : i64, scratch_operands = 1 : i64, tpu.core_type = #tpu.core_type<tc>, window_params = [{transform_indices = @transform_0, window_bounds = array<i64: 16, 64>}, {pipeline_mode = #tpu.pipeline_mode<synchronous>, transform_indices = @transform_1, window_bounds = array<i64: 64, 192>}, {pipeline_mode = #tpu.pipeline_mode<synchronous>, transform_indices = @transform_2, window_bounds = array<i64: 1, 192>}, {pipeline_mode = #tpu.pipeline_mode<synchronous>, transform_indices = @transform_3, window_bounds = array<i64: 64, 64>}, {pipeline_mode = #tpu.pipeline_mode<synchronous>, transform_indices = @transform_4, window_bounds = array<i64: 1, 64>}, {pipeline_mode = #tpu.pipeline_mode<synchronous>, transform_indices = @transform_5, window_bounds = array<i64: 16, 8>}, {pipeline_mode = #tpu.pipeline_mode<synchronous>, transform_indices = @transform_6, window_bounds = array<i64: 1, 64>}, {pipeline_mode = #tpu.pipeline_mode<synchronous>, transform_indices = @transform_7, window_bounds = array<i64: 1, 64>}, {pipeline_mode = #tpu.pipeline_mode<synchronous>, transform_indices = @transform_8, window_bounds = array<i64: 64, 128>}, {pipeline_mode = #tpu.pipeline_mode<synchronous>, transform_indices = @transform_9, window_bounds = array<i64: 1, 128>}, {pipeline_mode = #tpu.pipeline_mode<synchronous>, transform_indices = @transform_10, window_bounds = array<i64: 128, 64>}, {pipeline_mode = #tpu.pipeline_mode<synchronous>, transform_indices = @transform_11, window_bounds = array<i64: 1, 64>}, {pipeline_mode = #tpu.pipeline_mode<synchronous>, transform_indices = @transform_12, window_bounds = array<i64: 1, 64>}, {pipeline_mode = #tpu.pipeline_mode<synchronous>, transform_indices = @transform_13, window_bounds = array<i64: 1, 64>}, {transform_indices = @transform_14, window_bounds = array<i64: 16, 64>}]} {
    %c0 = arith.constant 0 : index
    %c0_0 = arith.constant 0 : index
    %0 = vector.load %arg1[%c0, %c0_0] : memref<16x64xf32, #tpu.memory_space<vmem>>, vector<16x64xf32>
    %c0_1 = arith.constant 0 : index
    %c0_2 = arith.constant 0 : index
    %1 = vector.load %arg2[%c0_1, %c0_2] : memref<64x192xf32, #tpu.memory_space<vmem>>, vector<64x192xf32>
    %cst = arith.constant dense<0.000000e+00> : vector<16x192xf32>
    %2 = tpu.matmul %0, %1, %cst {dimension_numbers = #tpu.dot_dimension_numbers<[1], [0], [0], [1], [0, 0, 1, 1], [], []>} : vector<16x64xf32>, vector<64x192xf32>, vector<16x192xf32> -> vector<16x192xf32>
    %c0_3 = arith.constant 0 : index
    %c0_4 = arith.constant 0 : index
    %3 = vector.load %arg3[%c0_3, %c0_4] : memref<1x192xf32, #tpu.memory_space<vmem>>, vector<1x192xf32>
    %4 = vector.broadcast %3 : vector<1x192xf32> to vector<16x192xf32>
    %5 = arith.addf %2, %4 : vector<16x192xf32>
    %6 = tpu.iota {dimensions = array<i32: 0>} : vector<8x8xi32>
    %7 = tpu.iota {dimensions = array<i32: 1>} : vector<8x8xi32>
    %8 = arith.subi %7, %6 : vector<8x8xi32>
    %c7_i32 = arith.constant 7 : i32
    %9 = vector.broadcast %c7_i32 : i32 to vector<8x8xi32>
    %10 = arith.addi %8, %9 : vector<8x8xi32>
    %c0_i32 = arith.constant 0 : i32
    %11 = vector.broadcast %c0_i32 : i32 to vector<8x8xi32>
    %12 = arith.cmpi eq, %10, %11 : vector<8x8xi32>
    %13 = arith.extui %12 : vector<8x8xi1> to vector<8x8xi32>
    %14 = arith.sitofp %13 : vector<8x8xi32> to vector<8x8xf32>
    %c1_i32 = arith.constant 1 : i32
    %15 = vector.broadcast %c1_i32 : i32 to vector<8x8xi32>
    %16 = arith.cmpi eq, %10, %15 : vector<8x8xi32>
    %17 = arith.extui %16 : vector<8x8xi1> to vector<8x8xi32>
    %18 = arith.sitofp %17 : vector<8x8xi32> to vector<8x8xf32>
    %c2_i32 = arith.constant 2 : i32
    %19 = vector.broadcast %c2_i32 : i32 to vector<8x8xi32>
    %20 = arith.cmpi eq, %10, %19 : vector<8x8xi32>
    %21 = arith.extui %20 : vector<8x8xi1> to vector<8x8xi32>
    %22 = arith.sitofp %21 : vector<8x8xi32> to vector<8x8xf32>
    %c3_i32 = arith.constant 3 : i32
    %23 = vector.broadcast %c3_i32 : i32 to vector<8x8xi32>
    %24 = arith.cmpi eq, %10, %23 : vector<8x8xi32>
    %25 = arith.extui %24 : vector<8x8xi1> to vector<8x8xi32>
    %26 = arith.sitofp %25 : vector<8x8xi32> to vector<8x8xf32>
    %c4_i32 = arith.constant 4 : i32
    %27 = vector.broadcast %c4_i32 : i32 to vector<8x8xi32>
    %28 = arith.cmpi eq, %10, %27 : vector<8x8xi32>
    %29 = arith.extui %28 : vector<8x8xi1> to vector<8x8xi32>
    %30 = arith.sitofp %29 : vector<8x8xi32> to vector<8x8xf32>
    %c5_i32 = arith.constant 5 : i32
    %31 = vector.broadcast %c5_i32 : i32 to vector<8x8xi32>
    %32 = arith.cmpi eq, %10, %31 : vector<8x8xi32>
    %33 = arith.extui %32 : vector<8x8xi1> to vector<8x8xi32>
    %34 = arith.sitofp %33 : vector<8x8xi32> to vector<8x8xf32>
    %c6_i32 = arith.constant 6 : i32
    %35 = vector.broadcast %c6_i32 : i32 to vector<8x8xi32>
    %36 = arith.cmpi eq, %10, %35 : vector<8x8xi32>
    %37 = arith.extui %36 : vector<8x8xi1> to vector<8x8xi32>
    %38 = arith.sitofp %37 : vector<8x8xi32> to vector<8x8xf32>
    %c7_i32_5 = arith.constant 7 : i32
    %39 = vector.broadcast %c7_i32_5 : i32 to vector<8x8xi32>
    %40 = arith.cmpi eq, %10, %39 : vector<8x8xi32>
    %41 = arith.extui %40 : vector<8x8xi1> to vector<8x8xi32>
    %42 = arith.sitofp %41 : vector<8x8xi32> to vector<8x8xf32>
    %c0_6 = arith.constant 0 : index
    %c0_7 = arith.constant 0 : index
    %43 = vector.load %arg6[%c0_6, %c0_7] : memref<16x8xf32, #tpu.memory_space<vmem>>, vector<16x8xf32>
    %44 = vector.extract_strided_slice %5 {offsets = [0, 0], sizes = [8, 16], strides = [1, 1]} : vector<16x192xf32> to vector<8x16xf32>
    %45 = vector.extract_strided_slice %5 {offsets = [0, 64], sizes = [8, 16], strides = [1, 1]} : vector<16x192xf32> to vector<8x16xf32>
    %46 = vector.extract_strided_slice %5 {offsets = [0, 128], sizes = [8, 16], strides = [1, 1]} : vector<16x192xf32> to vector<8x16xf32>
    %cst_8 = arith.constant dense<0.000000e+00> : vector<8x8xf32>
    %47 = tpu.matmul %44, %43, %cst_8 {dimension_numbers = #tpu.dot_dimension_numbers<[1], [0], [0], [1], [0, 0, 1, 1], [], []>} : vector<8x16xf32>, vector<16x8xf32>, vector<8x8xf32> -> vector<8x8xf32>
    %48 = vector.extract_strided_slice %47 {offsets = [0, 0], sizes = [8, 1], strides = [1, 1]} : vector<8x8xf32> to vector<8x1xf32>
    %49 = vector.broadcast %48 : vector<8x1xf32> to vector<8x8xf32>
    %50 = arith.mulf %14, %49 : vector<8x8xf32>
    %51 = vector.extract_strided_slice %47 {offsets = [0, 1], sizes = [8, 1], strides = [1, 1]} : vector<8x8xf32> to vector<8x1xf32>
    %52 = vector.broadcast %51 : vector<8x1xf32> to vector<8x8xf32>
    %53 = arith.mulf %18, %52 : vector<8x8xf32>
    %54 = arith.addf %50, %53 : vector<8x8xf32>
    %55 = vector.extract_strided_slice %47 {offsets = [0, 2], sizes = [8, 1], strides = [1, 1]} : vector<8x8xf32> to vector<8x1xf32>
    %56 = vector.broadcast %55 : vector<8x1xf32> to vector<8x8xf32>
    %57 = arith.mulf %22, %56 : vector<8x8xf32>
    %58 = arith.addf %54, %57 : vector<8x8xf32>
    %59 = vector.extract_strided_slice %47 {offsets = [0, 3], sizes = [8, 1], strides = [1, 1]} : vector<8x8xf32> to vector<8x1xf32>
    %60 = vector.broadcast %59 : vector<8x1xf32> to vector<8x8xf32>
    %61 = arith.mulf %26, %60 : vector<8x8xf32>
    %62 = arith.addf %58, %61 : vector<8x8xf32>
    %63 = vector.extract_strided_slice %47 {offsets = [0, 4], sizes = [8, 1], strides = [1, 1]} : vector<8x8xf32> to vector<8x1xf32>
    %64 = vector.broadcast %63 : vector<8x1xf32> to vector<8x8xf32>
    %65 = arith.mulf %30, %64 : vector<8x8xf32>
    %66 = arith.addf %62, %65 : vector<8x8xf32>
    %67 = vector.extract_strided_slice %47 {offsets = [0, 5], sizes = [8, 1], strides = [1, 1]} : vector<8x8xf32> to vector<8x1xf32>
    %68 = vector.broadcast %67 : vector<8x1xf32> to vector<8x8xf32>
    %69 = arith.mulf %34, %68 : vector<8x8xf32>
    %70 = arith.addf %66, %69 : vector<8x8xf32>
    %71 = vector.extract_strided_slice %47 {offsets = [0, 6], sizes = [8, 1], strides = [1, 1]} : vector<8x8xf32> to vector<8x1xf32>
    %72 = vector.broadcast %71 : vector<8x1xf32> to vector<8x8xf32>
    %73 = arith.mulf %38, %72 : vector<8x8xf32>
    %74 = arith.addf %70, %73 : vector<8x8xf32>
    %75 = vector.extract_strided_slice %47 {offsets = [0, 7], sizes = [8, 1], strides = [1, 1]} : vector<8x8xf32> to vector<8x1xf32>
    %76 = vector.broadcast %75 : vector<8x1xf32> to vector<8x8xf32>
    %77 = arith.mulf %42, %76 : vector<8x8xf32>
    %78 = arith.addf %74, %77 : vector<8x8xf32>
    %cst_9 = arith.constant dense<0.000000e+00> : vector<8x8xf32>
    %79 = tpu.matmul %44, %45, %cst_9 {dimension_numbers = #tpu.dot_dimension_numbers<[1], [1], [0], [0], [0, 0, 1, 0], [], []>} : vector<8x16xf32>, vector<8x16xf32>, vector<8x8xf32> -> vector<8x8xf32>
    %cst_10 = arith.constant 2.500000e-01 : f32
    %80 = vector.broadcast %cst_10 : f32 to vector<8x8xf32>
    %81 = arith.mulf %79, %80 : vector<8x8xf32>
    %82 = arith.addf %81, %78 : vector<8x8xf32>
    %cst_11 = arith.constant dense<0xFF800000> : vector<8xf32>
    %83 = vector.multi_reduction <maximumf>, %82, %cst_11 [1] : vector<8x8xf32> to vector<8xf32>
    %84 = vector.shape_cast %83 : vector<8xf32> to vector<8x1xf32>
    %85 = vector.broadcast %84 : vector<8x1xf32> to vector<8x8xf32>
    %86 = arith.subf %82, %85 : vector<8x8xf32>
    %87 = math.exp %86 : vector<8x8xf32>
    %cst_12 = arith.constant dense<0.000000e+00> : vector<8xf32>
    %88 = vector.multi_reduction <add>, %87, %cst_12 [1] : vector<8x8xf32> to vector<8xf32>
    %89 = vector.shape_cast %88 : vector<8xf32> to vector<8x1xf32>
    %90 = tpu.reciprocal %89 {approx = true} : vector<8x1xf32> -> vector<8x1xf32>
    %91 = vector.broadcast %90 : vector<8x1xf32> to vector<8x8xf32>
    %92 = arith.mulf %87, %91 : vector<8x8xf32>
    %cst_13 = arith.constant dense<0.000000e+00> : vector<8x16xf32>
    %93 = tpu.matmul %92, %46, %cst_13 {dimension_numbers = #tpu.dot_dimension_numbers<[1], [0], [0], [1], [0, 0, 1, 1], [], []>} : vector<8x8xf32>, vector<8x16xf32>, vector<8x16xf32> -> vector<8x16xf32>
    %c0_14 = arith.constant 0 : index
    %c0_15 = arith.constant 0 : index
    %94 = vector.load %arg16[%c0_14, %c0_15] : memref<16x64xf32, #tpu.memory_space<vmem>>, vector<8x16xf32>
    tpu.vector_store %arg16[%c0_14, %c0_15], %93 {strides = array<i32>} : memref<16x64xf32, #tpu.memory_space<vmem>>, vector<8x16xf32>,
    %95 = vector.extract_strided_slice %5 {offsets = [0, 16], sizes = [8, 16], strides = [1, 1]} : vector<16x192xf32> to vector<8x16xf32>
    %96 = vector.extract_strided_slice %5 {offsets = [0, 80], sizes = [8, 16], strides = [1, 1]} : vector<16x192xf32> to vector<8x16xf32>
    %97 = vector.extract_strided_slice %5 {offsets = [0, 144], sizes = [8, 16], strides = [1, 1]} : vector<16x192xf32> to vector<8x16xf32>
    %cst_16 = arith.constant dense<0.000000e+00> : vector<8x8xf32>
    %98 = tpu.matmul %95, %43, %cst_16 {dimension_numbers = #tpu.dot_dimension_numbers<[1], [0], [0], [1], [0, 0, 1, 1], [], []>} : vector<8x16xf32>, vector<16x8xf32>, vector<8x8xf32> -> vector<8x8xf32>
    %99 = vector.extract_strided_slice %98 {offsets = [0, 0], sizes = [8, 1], strides = [1, 1]} : vector<8x8xf32> to vector<8x1xf32>
    %100 = vector.broadcast %99 : vector<8x1xf32> to vector<8x8xf32>
    %101 = arith.mulf %14, %100 : vector<8x8xf32>
    %102 = vector.extract_strided_slice %98 {offsets = [0, 1], sizes = [8, 1], strides = [1, 1]} : vector<8x8xf32> to vector<8x1xf32>
    %103 = vector.broadcast %102 : vector<8x1xf32> to vector<8x8xf32>
    %104 = arith.mulf %18, %103 : vector<8x8xf32>
    %105 = arith.addf %101, %104 : vector<8x8xf32>
    %106 = vector.extract_strided_slice %98 {offsets = [0, 2], sizes = [8, 1], strides = [1, 1]} : vector<8x8xf32> to vector<8x1xf32>
    %107 = vector.broadcast %106 : vector<8x1xf32> to vector<8x8xf32>
    %108 = arith.mulf %22, %107 : vector<8x8xf32>
    %109 = arith.addf %105, %108 : vector<8x8xf32>
    %110 = vector.extract_strided_slice %98 {offsets = [0, 3], sizes = [8, 1], strides = [1, 1]} : vector<8x8xf32> to vector<8x1xf32>
    %111 = vector.broadcast %110 : vector<8x1xf32> to vector<8x8xf32>
    %112 = arith.mulf %26, %111 : vector<8x8xf32>
    %113 = arith.addf %109, %112 : vector<8x8xf32>
    %114 = vector.extract_strided_slice %98 {offsets = [0, 4], sizes = [8, 1], strides = [1, 1]} : vector<8x8xf32> to vector<8x1xf32>
    %115 = vector.broadcast %114 : vector<8x1xf32> to vector<8x8xf32>
    %116 = arith.mulf %30, %115 : vector<8x8xf32>
    %117 = arith.addf %113, %116 : vector<8x8xf32>
    %118 = vector.extract_strided_slice %98 {offsets = [0, 5], sizes = [8, 1], strides = [1, 1]} : vector<8x8xf32> to vector<8x1xf32>
    %119 = vector.broadcast %118 : vector<8x1xf32> to vector<8x8xf32>
    %120 = arith.mulf %34, %119 : vector<8x8xf32>
    %121 = arith.addf %117, %120 : vector<8x8xf32>
    %122 = vector.extract_strided_slice %98 {offsets = [0, 6], sizes = [8, 1], strides = [1, 1]} : vector<8x8xf32> to vector<8x1xf32>
    %123 = vector.broadcast %122 : vector<8x1xf32> to vector<8x8xf32>
    %124 = arith.mulf %38, %123 : vector<8x8xf32>
    %125 = arith.addf %121, %124 : vector<8x8xf32>
    %126 = vector.extract_strided_slice %98 {offsets = [0, 7], sizes = [8, 1], strides = [1, 1]} : vector<8x8xf32> to vector<8x1xf32>
    %127 = vector.broadcast %126 : vector<8x1xf32> to vector<8x8xf32>
    %128 = arith.mulf %42, %127 : vector<8x8xf32>
    %129 = arith.addf %125, %128 : vector<8x8xf32>
    %cst_17 = arith.constant dense<0.000000e+00> : vector<8x8xf32>
    %130 = tpu.matmul %95, %96, %cst_17 {dimension_numbers = #tpu.dot_dimension_numbers<[1], [1], [0], [0], [0, 0, 1, 0], [], []>} : vector<8x16xf32>, vector<8x16xf32>, vector<8x8xf32> -> vector<8x8xf32>
    %cst_18 = arith.constant 2.500000e-01 : f32
    %131 = vector.broadcast %cst_18 : f32 to vector<8x8xf32>
    %132 = arith.mulf %130, %131 : vector<8x8xf32>
    %133 = arith.addf %132, %129 : vector<8x8xf32>
    %cst_19 = arith.constant dense<0xFF800000> : vector<8xf32>
    %134 = vector.multi_reduction <maximumf>, %133, %cst_19 [1] : vector<8x8xf32> to vector<8xf32>
    %135 = vector.shape_cast %134 : vector<8xf32> to vector<8x1xf32>
    %136 = vector.broadcast %135 : vector<8x1xf32> to vector<8x8xf32>
    %137 = arith.subf %133, %136 : vector<8x8xf32>
    %138 = math.exp %137 : vector<8x8xf32>
    %cst_20 = arith.constant dense<0.000000e+00> : vector<8xf32>
    %139 = vector.multi_reduction <add>, %138, %cst_20 [1] : vector<8x8xf32> to vector<8xf32>
    %140 = vector.shape_cast %139 : vector<8xf32> to vector<8x1xf32>
    %141 = tpu.reciprocal %140 {approx = true} : vector<8x1xf32> -> vector<8x1xf32>
    %142 = vector.broadcast %141 : vector<8x1xf32> to vector<8x8xf32>
    %143 = arith.mulf %138, %142 : vector<8x8xf32>
    %cst_21 = arith.constant dense<0.000000e+00> : vector<8x16xf32>
    %144 = tpu.matmul %143, %97, %cst_21 {dimension_numbers = #tpu.dot_dimension_numbers<[1], [0], [0], [1], [0, 0, 1, 1], [], []>} : vector<8x8xf32>, vector<8x16xf32>, vector<8x16xf32> -> vector<8x16xf32>
    %c0_22 = arith.constant 0 : index
    %c16 = arith.constant 16 : index
    %145 = vector.load %arg16[%c0_22, %c16] : memref<16x64xf32, #tpu.memory_space<vmem>>, vector<8x16xf32>
    tpu.vector_store %arg16[%c0_22, %c16], %144 {strides = array<i32>} : memref<16x64xf32, #tpu.memory_space<vmem>>, vector<8x16xf32>,
    %146 = vector.extract_strided_slice %5 {offsets = [0, 32], sizes = [8, 16], strides = [1, 1]} : vector<16x192xf32> to vector<8x16xf32>
    %147 = vector.extract_strided_slice %5 {offsets = [0, 96], sizes = [8, 16], strides = [1, 1]} : vector<16x192xf32> to vector<8x16xf32>
    %148 = vector.extract_strided_slice %5 {offsets = [0, 160], sizes = [8, 16], strides = [1, 1]} : vector<16x192xf32> to vector<8x16xf32>
    %cst_23 = arith.constant dense<0.000000e+00> : vector<8x8xf32>
    %149 = tpu.matmul %146, %43, %cst_23 {dimension_numbers = #tpu.dot_dimension_numbers<[1], [0], [0], [1], [0, 0, 1, 1], [], []>} : vector<8x16xf32>, vector<16x8xf32>, vector<8x8xf32> -> vector<8x8xf32>
    %150 = vector.extract_strided_slice %149 {offsets = [0, 0], sizes = [8, 1], strides = [1, 1]} : vector<8x8xf32> to vector<8x1xf32>
    %151 = vector.broadcast %150 : vector<8x1xf32> to vector<8x8xf32>
    %152 = arith.mulf %14, %151 : vector<8x8xf32>
    %153 = vector.extract_strided_slice %149 {offsets = [0, 1], sizes = [8, 1], strides = [1, 1]} : vector<8x8xf32> to vector<8x1xf32>
    %154 = vector.broadcast %153 : vector<8x1xf32> to vector<8x8xf32>
    %155 = arith.mulf %18, %154 : vector<8x8xf32>
    %156 = arith.addf %152, %155 : vector<8x8xf32>
    %157 = vector.extract_strided_slice %149 {offsets = [0, 2], sizes = [8, 1], strides = [1, 1]} : vector<8x8xf32> to vector<8x1xf32>
    %158 = vector.broadcast %157 : vector<8x1xf32> to vector<8x8xf32>
    %159 = arith.mulf %22, %158 : vector<8x8xf32>
    %160 = arith.addf %156, %159 : vector<8x8xf32>
    %161 = vector.extract_strided_slice %149 {offsets = [0, 3], sizes = [8, 1], strides = [1, 1]} : vector<8x8xf32> to vector<8x1xf32>
    %162 = vector.broadcast %161 : vector<8x1xf32> to vector<8x8xf32>
    %163 = arith.mulf %26, %162 : vector<8x8xf32>
    %164 = arith.addf %160, %163 : vector<8x8xf32>
    %165 = vector.extract_strided_slice %149 {offsets = [0, 4], sizes = [8, 1], strides = [1, 1]} : vector<8x8xf32> to vector<8x1xf32>
    %166 = vector.broadcast %165 : vector<8x1xf32> to vector<8x8xf32>
    %167 = arith.mulf %30, %166 : vector<8x8xf32>
    %168 = arith.addf %164, %167 : vector<8x8xf32>
    %169 = vector.extract_strided_slice %149 {offsets = [0, 5], sizes = [8, 1], strides = [1, 1]} : vector<8x8xf32> to vector<8x1xf32>
    %170 = vector.broadcast %169 : vector<8x1xf32> to vector<8x8xf32>
    %171 = arith.mulf %34, %170 : vector<8x8xf32>
    %172 = arith.addf %168, %171 : vector<8x8xf32>
    %173 = vector.extract_strided_slice %149 {offsets = [0, 6], sizes = [8, 1], strides = [1, 1]} : vector<8x8xf32> to vector<8x1xf32>
    %174 = vector.broadcast %173 : vector<8x1xf32> to vector<8x8xf32>
    %175 = arith.mulf %38, %174 : vector<8x8xf32>
    %176 = arith.addf %172, %175 : vector<8x8xf32>
    %177 = vector.extract_strided_slice %149 {offsets = [0, 7], sizes = [8, 1], strides = [1, 1]} : vector<8x8xf32> to vector<8x1xf32>
    %178 = vector.broadcast %177 : vector<8x1xf32> to vector<8x8xf32>
    %179 = arith.mulf %42, %178 : vector<8x8xf32>
    %180 = arith.addf %176, %179 : vector<8x8xf32>
    %cst_24 = arith.constant dense<0.000000e+00> : vector<8x8xf32>
    %181 = tpu.matmul %146, %147, %cst_24 {dimension_numbers = #tpu.dot_dimension_numbers<[1], [1], [0], [0], [0, 0, 1, 0], [], []>} : vector<8x16xf32>, vector<8x16xf32>, vector<8x8xf32> -> vector<8x8xf32>
    %cst_25 = arith.constant 2.500000e-01 : f32
    %182 = vector.broadcast %cst_25 : f32 to vector<8x8xf32>
    %183 = arith.mulf %181, %182 : vector<8x8xf32>
    %184 = arith.addf %183, %180 : vector<8x8xf32>
    %cst_26 = arith.constant dense<0xFF800000> : vector<8xf32>
    %185 = vector.multi_reduction <maximumf>, %184, %cst_26 [1] : vector<8x8xf32> to vector<8xf32>
    %186 = vector.shape_cast %185 : vector<8xf32> to vector<8x1xf32>
    %187 = vector.broadcast %186 : vector<8x1xf32> to vector<8x8xf32>
    %188 = arith.subf %184, %187 : vector<8x8xf32>
    %189 = math.exp %188 : vector<8x8xf32>
    %cst_27 = arith.constant dense<0.000000e+00> : vector<8xf32>
    %190 = vector.multi_reduction <add>, %189, %cst_27 [1] : vector<8x8xf32> to vector<8xf32>
    %191 = vector.shape_cast %190 : vector<8xf32> to vector<8x1xf32>
    %192 = tpu.reciprocal %191 {approx = true} : vector<8x1xf32> -> vector<8x1xf32>
    %193 = vector.broadcast %192 : vector<8x1xf32> to vector<8x8xf32>
    %194 = arith.mulf %189, %193 : vector<8x8xf32>
    %cst_28 = arith.constant dense<0.000000e+00> : vector<8x16xf32>
    %195 = tpu.matmul %194, %148, %cst_28 {dimension_numbers = #tpu.dot_dimension_numbers<[1], [0], [0], [1], [0, 0, 1, 1], [], []>} : vector<8x8xf32>, vector<8x16xf32>, vector<8x16xf32> -> vector<8x16xf32>
    %c0_29 = arith.constant 0 : index
    %c32 = arith.constant 32 : index
    %196 = vector.load %arg16[%c0_29, %c32] : memref<16x64xf32, #tpu.memory_space<vmem>>, vector<8x16xf32>
    tpu.vector_store %arg16[%c0_29, %c32], %195 {strides = array<i32>} : memref<16x64xf32, #tpu.memory_space<vmem>>, vector<8x16xf32>,
    %197 = vector.extract_strided_slice %5 {offsets = [0, 48], sizes = [8, 16], strides = [1, 1]} : vector<16x192xf32> to vector<8x16xf32>
    %198 = vector.extract_strided_slice %5 {offsets = [0, 112], sizes = [8, 16], strides = [1, 1]} : vector<16x192xf32> to vector<8x16xf32>
    %199 = vector.extract_strided_slice %5 {offsets = [0, 176], sizes = [8, 16], strides = [1, 1]} : vector<16x192xf32> to vector<8x16xf32>
    %cst_30 = arith.constant dense<0.000000e+00> : vector<8x8xf32>
    %200 = tpu.matmul %197, %43, %cst_30 {dimension_numbers = #tpu.dot_dimension_numbers<[1], [0], [0], [1], [0, 0, 1, 1], [], []>} : vector<8x16xf32>, vector<16x8xf32>, vector<8x8xf32> -> vector<8x8xf32>
    %201 = vector.extract_strided_slice %200 {offsets = [0, 0], sizes = [8, 1], strides = [1, 1]} : vector<8x8xf32> to vector<8x1xf32>
    %202 = vector.broadcast %201 : vector<8x1xf32> to vector<8x8xf32>
    %203 = arith.mulf %14, %202 : vector<8x8xf32>
    %204 = vector.extract_strided_slice %200 {offsets = [0, 1], sizes = [8, 1], strides = [1, 1]} : vector<8x8xf32> to vector<8x1xf32>
    %205 = vector.broadcast %204 : vector<8x1xf32> to vector<8x8xf32>
    %206 = arith.mulf %18, %205 : vector<8x8xf32>
    %207 = arith.addf %203, %206 : vector<8x8xf32>
    %208 = vector.extract_strided_slice %200 {offsets = [0, 2], sizes = [8, 1], strides = [1, 1]} : vector<8x8xf32> to vector<8x1xf32>
    %209 = vector.broadcast %208 : vector<8x1xf32> to vector<8x8xf32>
    %210 = arith.mulf %22, %209 : vector<8x8xf32>
    %211 = arith.addf %207, %210 : vector<8x8xf32>
    %212 = vector.extract_strided_slice %200 {offsets = [0, 3], sizes = [8, 1], strides = [1, 1]} : vector<8x8xf32> to vector<8x1xf32>
    %213 = vector.broadcast %212 : vector<8x1xf32> to vector<8x8xf32>
    %214 = arith.mulf %26, %213 : vector<8x8xf32>
    %215 = arith.addf %211, %214 : vector<8x8xf32>
    %216 = vector.extract_strided_slice %200 {offsets = [0, 4], sizes = [8, 1], strides = [1, 1]} : vector<8x8xf32> to vector<8x1xf32>
    %217 = vector.broadcast %216 : vector<8x1xf32> to vector<8x8xf32>
    %218 = arith.mulf %30, %217 : vector<8x8xf32>
    %219 = arith.addf %215, %218 : vector<8x8xf32>
    %220 = vector.extract_strided_slice %200 {offsets = [0, 5], sizes = [8, 1], strides = [1, 1]} : vector<8x8xf32> to vector<8x1xf32>
    %221 = vector.broadcast %220 : vector<8x1xf32> to vector<8x8xf32>
    %222 = arith.mulf %34, %221 : vector<8x8xf32>
    %223 = arith.addf %219, %222 : vector<8x8xf32>
    %224 = vector.extract_strided_slice %200 {offsets = [0, 6], sizes = [8, 1], strides = [1, 1]} : vector<8x8xf32> to vector<8x1xf32>
    %225 = vector.broadcast %224 : vector<8x1xf32> to vector<8x8xf32>
    %226 = arith.mulf %38, %225 : vector<8x8xf32>
    %227 = arith.addf %223, %226 : vector<8x8xf32>
    %228 = vector.extract_strided_slice %200 {offsets = [0, 7], sizes = [8, 1], strides = [1, 1]} : vector<8x8xf32> to vector<8x1xf32>
    %229 = vector.broadcast %228 : vector<8x1xf32> to vector<8x8xf32>
    %230 = arith.mulf %42, %229 : vector<8x8xf32>
    %231 = arith.addf %227, %230 : vector<8x8xf32>
    %cst_31 = arith.constant dense<0.000000e+00> : vector<8x8xf32>
    %232 = tpu.matmul %197, %198, %cst_31 {dimension_numbers = #tpu.dot_dimension_numbers<[1], [1], [0], [0], [0, 0, 1, 0], [], []>} : vector<8x16xf32>, vector<8x16xf32>, vector<8x8xf32> -> vector<8x8xf32>
    %cst_32 = arith.constant 2.500000e-01 : f32
    %233 = vector.broadcast %cst_32 : f32 to vector<8x8xf32>
    %234 = arith.mulf %232, %233 : vector<8x8xf32>
    %235 = arith.addf %234, %231 : vector<8x8xf32>
    %cst_33 = arith.constant dense<0xFF800000> : vector<8xf32>
    %236 = vector.multi_reduction <maximumf>, %235, %cst_33 [1] : vector<8x8xf32> to vector<8xf32>
    %237 = vector.shape_cast %236 : vector<8xf32> to vector<8x1xf32>
    %238 = vector.broadcast %237 : vector<8x1xf32> to vector<8x8xf32>
    %239 = arith.subf %235, %238 : vector<8x8xf32>
    %240 = math.exp %239 : vector<8x8xf32>
    %cst_34 = arith.constant dense<0.000000e+00> : vector<8xf32>
    %241 = vector.multi_reduction <add>, %240, %cst_34 [1] : vector<8x8xf32> to vector<8xf32>
    %242 = vector.shape_cast %241 : vector<8xf32> to vector<8x1xf32>
    %243 = tpu.reciprocal %242 {approx = true} : vector<8x1xf32> -> vector<8x1xf32>
    %244 = vector.broadcast %243 : vector<8x1xf32> to vector<8x8xf32>
    %245 = arith.mulf %240, %244 : vector<8x8xf32>
    %cst_35 = arith.constant dense<0.000000e+00> : vector<8x16xf32>
    %246 = tpu.matmul %245, %199, %cst_35 {dimension_numbers = #tpu.dot_dimension_numbers<[1], [0], [0], [1], [0, 0, 1, 1], [], []>} : vector<8x8xf32>, vector<8x16xf32>, vector<8x16xf32> -> vector<8x16xf32>
    %c0_36 = arith.constant 0 : index
    %c48 = arith.constant 48 : index
    %247 = vector.load %arg16[%c0_36, %c48] : memref<16x64xf32, #tpu.memory_space<vmem>>, vector<8x16xf32>
    tpu.vector_store %arg16[%c0_36, %c48], %246 {strides = array<i32>} : memref<16x64xf32, #tpu.memory_space<vmem>>, vector<8x16xf32>,
    %248 = vector.extract_strided_slice %5 {offsets = [8, 0], sizes = [8, 16], strides = [1, 1]} : vector<16x192xf32> to vector<8x16xf32>
    %249 = vector.extract_strided_slice %5 {offsets = [8, 64], sizes = [8, 16], strides = [1, 1]} : vector<16x192xf32> to vector<8x16xf32>
    %250 = vector.extract_strided_slice %5 {offsets = [8, 128], sizes = [8, 16], strides = [1, 1]} : vector<16x192xf32> to vector<8x16xf32>
    %cst_37 = arith.constant dense<0.000000e+00> : vector<8x8xf32>
    %251 = tpu.matmul %248, %43, %cst_37 {dimension_numbers = #tpu.dot_dimension_numbers<[1], [0], [0], [1], [0, 0, 1, 1], [], []>} : vector<8x16xf32>, vector<16x8xf32>, vector<8x8xf32> -> vector<8x8xf32>
    %252 = vector.extract_strided_slice %251 {offsets = [0, 0], sizes = [8, 1], strides = [1, 1]} : vector<8x8xf32> to vector<8x1xf32>
    %253 = vector.broadcast %252 : vector<8x1xf32> to vector<8x8xf32>
    %254 = arith.mulf %14, %253 : vector<8x8xf32>
    %255 = vector.extract_strided_slice %251 {offsets = [0, 1], sizes = [8, 1], strides = [1, 1]} : vector<8x8xf32> to vector<8x1xf32>
    %256 = vector.broadcast %255 : vector<8x1xf32> to vector<8x8xf32>
    %257 = arith.mulf %18, %256 : vector<8x8xf32>
    %258 = arith.addf %254, %257 : vector<8x8xf32>
    %259 = vector.extract_strided_slice %251 {offsets = [0, 2], sizes = [8, 1], strides = [1, 1]} : vector<8x8xf32> to vector<8x1xf32>
    %260 = vector.broadcast %259 : vector<8x1xf32> to vector<8x8xf32>
    %261 = arith.mulf %22, %260 : vector<8x8xf32>
    %262 = arith.addf %258, %261 : vector<8x8xf32>
    %263 = vector.extract_strided_slice %251 {offsets = [0, 3], sizes = [8, 1], strides = [1, 1]} : vector<8x8xf32> to vector<8x1xf32>
    %264 = vector.broadcast %263 : vector<8x1xf32> to vector<8x8xf32>
    %265 = arith.mulf %26, %264 : vector<8x8xf32>
    %266 = arith.addf %262, %265 : vector<8x8xf32>
    %267 = vector.extract_strided_slice %251 {offsets = [0, 4], sizes = [8, 1], strides = [1, 1]} : vector<8x8xf32> to vector<8x1xf32>
    %268 = vector.broadcast %267 : vector<8x1xf32> to vector<8x8xf32>
    %269 = arith.mulf %30, %268 : vector<8x8xf32>
    %270 = arith.addf %266, %269 : vector<8x8xf32>
    %271 = vector.extract_strided_slice %251 {offsets = [0, 5], sizes = [8, 1], strides = [1, 1]} : vector<8x8xf32> to vector<8x1xf32>
    %272 = vector.broadcast %271 : vector<8x1xf32> to vector<8x8xf32>
    %273 = arith.mulf %34, %272 : vector<8x8xf32>
    %274 = arith.addf %270, %273 : vector<8x8xf32>
    %275 = vector.extract_strided_slice %251 {offsets = [0, 6], sizes = [8, 1], strides = [1, 1]} : vector<8x8xf32> to vector<8x1xf32>
    %276 = vector.broadcast %275 : vector<8x1xf32> to vector<8x8xf32>
    %277 = arith.mulf %38, %276 : vector<8x8xf32>
    %278 = arith.addf %274, %277 : vector<8x8xf32>
    %279 = vector.extract_strided_slice %251 {offsets = [0, 7], sizes = [8, 1], strides = [1, 1]} : vector<8x8xf32> to vector<8x1xf32>
    %280 = vector.broadcast %279 : vector<8x1xf32> to vector<8x8xf32>
    %281 = arith.mulf %42, %280 : vector<8x8xf32>
    %282 = arith.addf %278, %281 : vector<8x8xf32>
    %cst_38 = arith.constant dense<0.000000e+00> : vector<8x8xf32>
    %283 = tpu.matmul %248, %249, %cst_38 {dimension_numbers = #tpu.dot_dimension_numbers<[1], [1], [0], [0], [0, 0, 1, 0], [], []>} : vector<8x16xf32>, vector<8x16xf32>, vector<8x8xf32> -> vector<8x8xf32>
    %cst_39 = arith.constant 2.500000e-01 : f32
    %284 = vector.broadcast %cst_39 : f32 to vector<8x8xf32>
    %285 = arith.mulf %283, %284 : vector<8x8xf32>
    %286 = arith.addf %285, %282 : vector<8x8xf32>
    %cst_40 = arith.constant dense<0xFF800000> : vector<8xf32>
    %287 = vector.multi_reduction <maximumf>, %286, %cst_40 [1] : vector<8x8xf32> to vector<8xf32>
    %288 = vector.shape_cast %287 : vector<8xf32> to vector<8x1xf32>
    %289 = vector.broadcast %288 : vector<8x1xf32> to vector<8x8xf32>
    %290 = arith.subf %286, %289 : vector<8x8xf32>
    %291 = math.exp %290 : vector<8x8xf32>
    %cst_41 = arith.constant dense<0.000000e+00> : vector<8xf32>
    %292 = vector.multi_reduction <add>, %291, %cst_41 [1] : vector<8x8xf32> to vector<8xf32>
    %293 = vector.shape_cast %292 : vector<8xf32> to vector<8x1xf32>
    %294 = tpu.reciprocal %293 {approx = true} : vector<8x1xf32> -> vector<8x1xf32>
    %295 = vector.broadcast %294 : vector<8x1xf32> to vector<8x8xf32>
    %296 = arith.mulf %291, %295 : vector<8x8xf32>
    %cst_42 = arith.constant dense<0.000000e+00> : vector<8x16xf32>
    %297 = tpu.matmul %296, %250, %cst_42 {dimension_numbers = #tpu.dot_dimension_numbers<[1], [0], [0], [1], [0, 0, 1, 1], [], []>} : vector<8x8xf32>, vector<8x16xf32>, vector<8x16xf32> -> vector<8x16xf32>
    %c8 = arith.constant 8 : index
    %c0_43 = arith.constant 0 : index
    %298 = vector.load %arg16[%c8, %c0_43] : memref<16x64xf32, #tpu.memory_space<vmem>>, vector<8x16xf32>
    tpu.vector_store %arg16[%c8, %c0_43], %297 {strides = array<i32>} : memref<16x64xf32, #tpu.memory_space<vmem>>, vector<8x16xf32>,
    %299 = vector.extract_strided_slice %5 {offsets = [8, 16], sizes = [8, 16], strides = [1, 1]} : vector<16x192xf32> to vector<8x16xf32>
    %300 = vector.extract_strided_slice %5 {offsets = [8, 80], sizes = [8, 16], strides = [1, 1]} : vector<16x192xf32> to vector<8x16xf32>
    %301 = vector.extract_strided_slice %5 {offsets = [8, 144], sizes = [8, 16], strides = [1, 1]} : vector<16x192xf32> to vector<8x16xf32>
    %cst_44 = arith.constant dense<0.000000e+00> : vector<8x8xf32>
    %302 = tpu.matmul %299, %43, %cst_44 {dimension_numbers = #tpu.dot_dimension_numbers<[1], [0], [0], [1], [0, 0, 1, 1], [], []>} : vector<8x16xf32>, vector<16x8xf32>, vector<8x8xf32> -> vector<8x8xf32>
    %303 = vector.extract_strided_slice %302 {offsets = [0, 0], sizes = [8, 1], strides = [1, 1]} : vector<8x8xf32> to vector<8x1xf32>
    %304 = vector.broadcast %303 : vector<8x1xf32> to vector<8x8xf32>
    %305 = arith.mulf %14, %304 : vector<8x8xf32>
    %306 = vector.extract_strided_slice %302 {offsets = [0, 1], sizes = [8, 1], strides = [1, 1]} : vector<8x8xf32> to vector<8x1xf32>
    %307 = vector.broadcast %306 : vector<8x1xf32> to vector<8x8xf32>
    %308 = arith.mulf %18, %307 : vector<8x8xf32>
    %309 = arith.addf %305, %308 : vector<8x8xf32>
    %310 = vector.extract_strided_slice %302 {offsets = [0, 2], sizes = [8, 1], strides = [1, 1]} : vector<8x8xf32> to vector<8x1xf32>
    %311 = vector.broadcast %310 : vector<8x1xf32> to vector<8x8xf32>
    %312 = arith.mulf %22, %311 : vector<8x8xf32>
    %313 = arith.addf %309, %312 : vector<8x8xf32>
    %314 = vector.extract_strided_slice %302 {offsets = [0, 3], sizes = [8, 1], strides = [1, 1]} : vector<8x8xf32> to vector<8x1xf32>
    %315 = vector.broadcast %314 : vector<8x1xf32> to vector<8x8xf32>
    %316 = arith.mulf %26, %315 : vector<8x8xf32>
    %317 = arith.addf %313, %316 : vector<8x8xf32>
    %318 = vector.extract_strided_slice %302 {offsets = [0, 4], sizes = [8, 1], strides = [1, 1]} : vector<8x8xf32> to vector<8x1xf32>
    %319 = vector.broadcast %318 : vector<8x1xf32> to vector<8x8xf32>
    %320 = arith.mulf %30, %319 : vector<8x8xf32>
    %321 = arith.addf %317, %320 : vector<8x8xf32>
    %322 = vector.extract_strided_slice %302 {offsets = [0, 5], sizes = [8, 1], strides = [1, 1]} : vector<8x8xf32> to vector<8x1xf32>
    %323 = vector.broadcast %322 : vector<8x1xf32> to vector<8x8xf32>
    %324 = arith.mulf %34, %323 : vector<8x8xf32>
    %325 = arith.addf %321, %324 : vector<8x8xf32>
    %326 = vector.extract_strided_slice %302 {offsets = [0, 6], sizes = [8, 1], strides = [1, 1]} : vector<8x8xf32> to vector<8x1xf32>
    %327 = vector.broadcast %326 : vector<8x1xf32> to vector<8x8xf32>
    %328 = arith.mulf %38, %327 : vector<8x8xf32>
    %329 = arith.addf %325, %328 : vector<8x8xf32>
    %330 = vector.extract_strided_slice %302 {offsets = [0, 7], sizes = [8, 1], strides = [1, 1]} : vector<8x8xf32> to vector<8x1xf32>
    %331 = vector.broadcast %330 : vector<8x1xf32> to vector<8x8xf32>
    %332 = arith.mulf %42, %331 : vector<8x8xf32>
    %333 = arith.addf %329, %332 : vector<8x8xf32>
    %cst_45 = arith.constant dense<0.000000e+00> : vector<8x8xf32>
    %334 = tpu.matmul %299, %300, %cst_45 {dimension_numbers = #tpu.dot_dimension_numbers<[1], [1], [0], [0], [0, 0, 1, 0], [], []>} : vector<8x16xf32>, vector<8x16xf32>, vector<8x8xf32> -> vector<8x8xf32>
    %cst_46 = arith.constant 2.500000e-01 : f32
    %335 = vector.broadcast %cst_46 : f32 to vector<8x8xf32>
    %336 = arith.mulf %334, %335 : vector<8x8xf32>
    %337 = arith.addf %336, %333 : vector<8x8xf32>
    %cst_47 = arith.constant dense<0xFF800000> : vector<8xf32>
    %338 = vector.multi_reduction <maximumf>, %337, %cst_47 [1] : vector<8x8xf32> to vector<8xf32>
    %339 = vector.shape_cast %338 : vector<8xf32> to vector<8x1xf32>
    %340 = vector.broadcast %339 : vector<8x1xf32> to vector<8x8xf32>
    %341 = arith.subf %337, %340 : vector<8x8xf32>
    %342 = math.exp %341 : vector<8x8xf32>
    %cst_48 = arith.constant dense<0.000000e+00> : vector<8xf32>
    %343 = vector.multi_reduction <add>, %342, %cst_48 [1] : vector<8x8xf32> to vector<8xf32>
    %344 = vector.shape_cast %343 : vector<8xf32> to vector<8x1xf32>
    %345 = tpu.reciprocal %344 {approx = true} : vector<8x1xf32> -> vector<8x1xf32>
    %346 = vector.broadcast %345 : vector<8x1xf32> to vector<8x8xf32>
    %347 = arith.mulf %342, %346 : vector<8x8xf32>
    %cst_49 = arith.constant dense<0.000000e+00> : vector<8x16xf32>
    %348 = tpu.matmul %347, %301, %cst_49 {dimension_numbers = #tpu.dot_dimension_numbers<[1], [0], [0], [1], [0, 0, 1, 1], [], []>} : vector<8x8xf32>, vector<8x16xf32>, vector<8x16xf32> -> vector<8x16xf32>
    %c8_50 = arith.constant 8 : index
    %c16_51 = arith.constant 16 : index
    %349 = vector.load %arg16[%c8_50, %c16_51] : memref<16x64xf32, #tpu.memory_space<vmem>>, vector<8x16xf32>
    tpu.vector_store %arg16[%c8_50, %c16_51], %348 {strides = array<i32>} : memref<16x64xf32, #tpu.memory_space<vmem>>, vector<8x16xf32>,
    %350 = vector.extract_strided_slice %5 {offsets = [8, 32], sizes = [8, 16], strides = [1, 1]} : vector<16x192xf32> to vector<8x16xf32>
    %351 = vector.extract_strided_slice %5 {offsets = [8, 96], sizes = [8, 16], strides = [1, 1]} : vector<16x192xf32> to vector<8x16xf32>
    %352 = vector.extract_strided_slice %5 {offsets = [8, 160], sizes = [8, 16], strides = [1, 1]} : vector<16x192xf32> to vector<8x16xf32>
    %cst_52 = arith.constant dense<0.000000e+00> : vector<8x8xf32>
    %353 = tpu.matmul %350, %43, %cst_52 {dimension_numbers = #tpu.dot_dimension_numbers<[1], [0], [0], [1], [0, 0, 1, 1], [], []>} : vector<8x16xf32>, vector<16x8xf32>, vector<8x8xf32> -> vector<8x8xf32>
    %354 = vector.extract_strided_slice %353 {offsets = [0, 0], sizes = [8, 1], strides = [1, 1]} : vector<8x8xf32> to vector<8x1xf32>
    %355 = vector.broadcast %354 : vector<8x1xf32> to vector<8x8xf32>
    %356 = arith.mulf %14, %355 : vector<8x8xf32>
    %357 = vector.extract_strided_slice %353 {offsets = [0, 1], sizes = [8, 1], strides = [1, 1]} : vector<8x8xf32> to vector<8x1xf32>
    %358 = vector.broadcast %357 : vector<8x1xf32> to vector<8x8xf32>
    %359 = arith.mulf %18, %358 : vector<8x8xf32>
    %360 = arith.addf %356, %359 : vector<8x8xf32>
    %361 = vector.extract_strided_slice %353 {offsets = [0, 2], sizes = [8, 1], strides = [1, 1]} : vector<8x8xf32> to vector<8x1xf32>
    %362 = vector.broadcast %361 : vector<8x1xf32> to vector<8x8xf32>
    %363 = arith.mulf %22, %362 : vector<8x8xf32>
    %364 = arith.addf %360, %363 : vector<8x8xf32>
    %365 = vector.extract_strided_slice %353 {offsets = [0, 3], sizes = [8, 1], strides = [1, 1]} : vector<8x8xf32> to vector<8x1xf32>
    %366 = vector.broadcast %365 : vector<8x1xf32> to vector<8x8xf32>
    %367 = arith.mulf %26, %366 : vector<8x8xf32>
    %368 = arith.addf %364, %367 : vector<8x8xf32>
    %369 = vector.extract_strided_slice %353 {offsets = [0, 4], sizes = [8, 1], strides = [1, 1]} : vector<8x8xf32> to vector<8x1xf32>
    %370 = vector.broadcast %369 : vector<8x1xf32> to vector<8x8xf32>
    %371 = arith.mulf %30, %370 : vector<8x8xf32>
    %372 = arith.addf %368, %371 : vector<8x8xf32>
    %373 = vector.extract_strided_slice %353 {offsets = [0, 5], sizes = [8, 1], strides = [1, 1]} : vector<8x8xf32> to vector<8x1xf32>
    %374 = vector.broadcast %373 : vector<8x1xf32> to vector<8x8xf32>
    %375 = arith.mulf %34, %374 : vector<8x8xf32>
    %376 = arith.addf %372, %375 : vector<8x8xf32>
    %377 = vector.extract_strided_slice %353 {offsets = [0, 6], sizes = [8, 1], strides = [1, 1]} : vector<8x8xf32> to vector<8x1xf32>
    %378 = vector.broadcast %377 : vector<8x1xf32> to vector<8x8xf32>
    %379 = arith.mulf %38, %378 : vector<8x8xf32>
    %380 = arith.addf %376, %379 : vector<8x8xf32>
    %381 = vector.extract_strided_slice %353 {offsets = [0, 7], sizes = [8, 1], strides = [1, 1]} : vector<8x8xf32> to vector<8x1xf32>
    %382 = vector.broadcast %381 : vector<8x1xf32> to vector<8x8xf32>
    %383 = arith.mulf %42, %382 : vector<8x8xf32>
    %384 = arith.addf %380, %383 : vector<8x8xf32>
    %cst_53 = arith.constant dense<0.000000e+00> : vector<8x8xf32>
    %385 = tpu.matmul %350, %351, %cst_53 {dimension_numbers = #tpu.dot_dimension_numbers<[1], [1], [0], [0], [0, 0, 1, 0], [], []>} : vector<8x16xf32>, vector<8x16xf32>, vector<8x8xf32> -> vector<8x8xf32>
    %cst_54 = arith.constant 2.500000e-01 : f32
    %386 = vector.broadcast %cst_54 : f32 to vector<8x8xf32>
    %387 = arith.mulf %385, %386 : vector<8x8xf32>
    %388 = arith.addf %387, %384 : vector<8x8xf32>
    %cst_55 = arith.constant dense<0xFF800000> : vector<8xf32>
    %389 = vector.multi_reduction <maximumf>, %388, %cst_55 [1] : vector<8x8xf32> to vector<8xf32>
    %390 = vector.shape_cast %389 : vector<8xf32> to vector<8x1xf32>
    %391 = vector.broadcast %390 : vector<8x1xf32> to vector<8x8xf32>
    %392 = arith.subf %388, %391 : vector<8x8xf32>
    %393 = math.exp %392 : vector<8x8xf32>
    %cst_56 = arith.constant dense<0.000000e+00> : vector<8xf32>
    %394 = vector.multi_reduction <add>, %393, %cst_56 [1] : vector<8x8xf32> to vector<8xf32>
    %395 = vector.shape_cast %394 : vector<8xf32> to vector<8x1xf32>
    %396 = tpu.reciprocal %395 {approx = true} : vector<8x1xf32> -> vector<8x1xf32>
    %397 = vector.broadcast %396 : vector<8x1xf32> to vector<8x8xf32>
    %398 = arith.mulf %393, %397 : vector<8x8xf32>
    %cst_57 = arith.constant dense<0.000000e+00> : vector<8x16xf32>
    %399 = tpu.matmul %398, %352, %cst_57 {dimension_numbers = #tpu.dot_dimension_numbers<[1], [0], [0], [1], [0, 0, 1, 1], [], []>} : vector<8x8xf32>, vector<8x16xf32>, vector<8x16xf32> -> vector<8x16xf32>
    %c8_58 = arith.constant 8 : index
    %c32_59 = arith.constant 32 : index
    %400 = vector.load %arg16[%c8_58, %c32_59] : memref<16x64xf32, #tpu.memory_space<vmem>>, vector<8x16xf32>
    tpu.vector_store %arg16[%c8_58, %c32_59], %399 {strides = array<i32>} : memref<16x64xf32, #tpu.memory_space<vmem>>, vector<8x16xf32>,
    %401 = vector.extract_strided_slice %5 {offsets = [8, 48], sizes = [8, 16], strides = [1, 1]} : vector<16x192xf32> to vector<8x16xf32>
    %402 = vector.extract_strided_slice %5 {offsets = [8, 112], sizes = [8, 16], strides = [1, 1]} : vector<16x192xf32> to vector<8x16xf32>
    %403 = vector.extract_strided_slice %5 {offsets = [8, 176], sizes = [8, 16], strides = [1, 1]} : vector<16x192xf32> to vector<8x16xf32>
    %cst_60 = arith.constant dense<0.000000e+00> : vector<8x8xf32>
    %404 = tpu.matmul %401, %43, %cst_60 {dimension_numbers = #tpu.dot_dimension_numbers<[1], [0], [0], [1], [0, 0, 1, 1], [], []>} : vector<8x16xf32>, vector<16x8xf32>, vector<8x8xf32> -> vector<8x8xf32>
    %405 = vector.extract_strided_slice %404 {offsets = [0, 0], sizes = [8, 1], strides = [1, 1]} : vector<8x8xf32> to vector<8x1xf32>
    %406 = vector.broadcast %405 : vector<8x1xf32> to vector<8x8xf32>
    %407 = arith.mulf %14, %406 : vector<8x8xf32>
    %408 = vector.extract_strided_slice %404 {offsets = [0, 1], sizes = [8, 1], strides = [1, 1]} : vector<8x8xf32> to vector<8x1xf32>
    %409 = vector.broadcast %408 : vector<8x1xf32> to vector<8x8xf32>
    %410 = arith.mulf %18, %409 : vector<8x8xf32>
    %411 = arith.addf %407, %410 : vector<8x8xf32>
    %412 = vector.extract_strided_slice %404 {offsets = [0, 2], sizes = [8, 1], strides = [1, 1]} : vector<8x8xf32> to vector<8x1xf32>
    %413 = vector.broadcast %412 : vector<8x1xf32> to vector<8x8xf32>
    %414 = arith.mulf %22, %413 : vector<8x8xf32>
    %415 = arith.addf %411, %414 : vector<8x8xf32>
    %416 = vector.extract_strided_slice %404 {offsets = [0, 3], sizes = [8, 1], strides = [1, 1]} : vector<8x8xf32> to vector<8x1xf32>
    %417 = vector.broadcast %416 : vector<8x1xf32> to vector<8x8xf32>
    %418 = arith.mulf %26, %417 : vector<8x8xf32>
    %419 = arith.addf %415, %418 : vector<8x8xf32>
    %420 = vector.extract_strided_slice %404 {offsets = [0, 4], sizes = [8, 1], strides = [1, 1]} : vector<8x8xf32> to vector<8x1xf32>
    %421 = vector.broadcast %420 : vector<8x1xf32> to vector<8x8xf32>
    %422 = arith.mulf %30, %421 : vector<8x8xf32>
    %423 = arith.addf %419, %422 : vector<8x8xf32>
    %424 = vector.extract_strided_slice %404 {offsets = [0, 5], sizes = [8, 1], strides = [1, 1]} : vector<8x8xf32> to vector<8x1xf32>
    %425 = vector.broadcast %424 : vector<8x1xf32> to vector<8x8xf32>
    %426 = arith.mulf %34, %425 : vector<8x8xf32>
    %427 = arith.addf %423, %426 : vector<8x8xf32>
    %428 = vector.extract_strided_slice %404 {offsets = [0, 6], sizes = [8, 1], strides = [1, 1]} : vector<8x8xf32> to vector<8x1xf32>
    %429 = vector.broadcast %428 : vector<8x1xf32> to vector<8x8xf32>
    %430 = arith.mulf %38, %429 : vector<8x8xf32>
    %431 = arith.addf %427, %430 : vector<8x8xf32>
    %432 = vector.extract_strided_slice %404 {offsets = [0, 7], sizes = [8, 1], strides = [1, 1]} : vector<8x8xf32> to vector<8x1xf32>
    %433 = vector.broadcast %432 : vector<8x1xf32> to vector<8x8xf32>
    %434 = arith.mulf %42, %433 : vector<8x8xf32>
    %435 = arith.addf %431, %434 : vector<8x8xf32>
    %cst_61 = arith.constant dense<0.000000e+00> : vector<8x8xf32>
    %436 = tpu.matmul %401, %402, %cst_61 {dimension_numbers = #tpu.dot_dimension_numbers<[1], [1], [0], [0], [0, 0, 1, 0], [], []>} : vector<8x16xf32>, vector<8x16xf32>, vector<8x8xf32> -> vector<8x8xf32>
    %cst_62 = arith.constant 2.500000e-01 : f32
    %437 = vector.broadcast %cst_62 : f32 to vector<8x8xf32>
    %438 = arith.mulf %436, %437 : vector<8x8xf32>
    %439 = arith.addf %438, %435 : vector<8x8xf32>
    %cst_63 = arith.constant dense<0xFF800000> : vector<8xf32>
    %440 = vector.multi_reduction <maximumf>, %439, %cst_63 [1] : vector<8x8xf32> to vector<8xf32>
    %441 = vector.shape_cast %440 : vector<8xf32> to vector<8x1xf32>
    %442 = vector.broadcast %441 : vector<8x1xf32> to vector<8x8xf32>
    %443 = arith.subf %439, %442 : vector<8x8xf32>
    %444 = math.exp %443 : vector<8x8xf32>
    %cst_64 = arith.constant dense<0.000000e+00> : vector<8xf32>
    %445 = vector.multi_reduction <add>, %444, %cst_64 [1] : vector<8x8xf32> to vector<8xf32>
    %446 = vector.shape_cast %445 : vector<8xf32> to vector<8x1xf32>
    %447 = tpu.reciprocal %446 {approx = true} : vector<8x1xf32> -> vector<8x1xf32>
    %448 = vector.broadcast %447 : vector<8x1xf32> to vector<8x8xf32>
    %449 = arith.mulf %444, %448 : vector<8x8xf32>
    %cst_65 = arith.constant dense<0.000000e+00> : vector<8x16xf32>
    %450 = tpu.matmul %449, %403, %cst_65 {dimension_numbers = #tpu.dot_dimension_numbers<[1], [0], [0], [1], [0, 0, 1, 1], [], []>} : vector<8x8xf32>, vector<8x16xf32>, vector<8x16xf32> -> vector<8x16xf32>
    %c8_66 = arith.constant 8 : index
    %c48_67 = arith.constant 48 : index
    %451 = vector.load %arg16[%c8_66, %c48_67] : memref<16x64xf32, #tpu.memory_space<vmem>>, vector<8x16xf32>
    tpu.vector_store %arg16[%c8_66, %c48_67], %450 {strides = array<i32>} : memref<16x64xf32, #tpu.memory_space<vmem>>, vector<8x16xf32>,
    %c0_68 = arith.constant 0 : index
    %c0_69 = arith.constant 0 : index
    %452 = vector.load %arg16[%c0_68, %c0_69] : memref<16x64xf32, #tpu.memory_space<vmem>>, vector<16x64xf32>
    %c0_70 = arith.constant 0 : index
    %c0_71 = arith.constant 0 : index
    %453 = vector.load %arg4[%c0_70, %c0_71] : memref<64x64xf32, #tpu.memory_space<vmem>>, vector<64x64xf32>
    %cst_72 = arith.constant dense<0.000000e+00> : vector<16x64xf32>
    %454 = tpu.matmul %452, %453, %cst_72 {dimension_numbers = #tpu.dot_dimension_numbers<[1], [0], [0], [1], [0, 0, 1, 1], [], []>} : vector<16x64xf32>, vector<64x64xf32>, vector<16x64xf32> -> vector<16x64xf32>
    %c0_73 = arith.constant 0 : index
    %c0_74 = arith.constant 0 : index
    %455 = vector.load %arg5[%c0_73, %c0_74] : memref<1x64xf32, #tpu.memory_space<vmem>>, vector<1x64xf32>
    %456 = vector.broadcast %455 : vector<1x64xf32> to vector<16x64xf32>
    %457 = arith.addf %454, %456 : vector<16x64xf32>
    %458 = arith.addf %0, %457 : vector<16x64xf32>
    %c0_75 = arith.constant 0 : index
    %c0_76 = arith.constant 0 : index
    %459 = vector.load %arg7[%c0_75, %c0_76] : memref<1x64xf32, #tpu.memory_space<vmem>>, vector<1x64xf32>
    %c0_77 = arith.constant 0 : index
    %c0_78 = arith.constant 0 : index
    %460 = vector.load %arg8[%c0_77, %c0_78] : memref<1x64xf32, #tpu.memory_space<vmem>>, vector<1x64xf32>
    %cst_79 = arith.constant dense<0.000000e+00> : vector<16xf32>
    %461 = vector.multi_reduction <add>, %458, %cst_79 [1] : vector<16x64xf32> to vector<16xf32>
    %462 = vector.shape_cast %461 : vector<16xf32> to vector<16x1xf32>
    %cst_80 = arith.constant 6.400000e+01 : f32
    %463 = vector.broadcast %cst_80 : f32 to vector<16x1xf32>
    %464 = arith.divf %462, %463 : vector<16x1xf32>
    %465 = vector.broadcast %464 : vector<16x1xf32> to vector<16x64xf32>
    %466 = arith.subf %458, %465 : vector<16x64xf32>
    %467 = vector.broadcast %464 : vector<16x1xf32> to vector<16x64xf32>
    %468 = arith.subf %458, %467 : vector<16x64xf32>
    %469 = arith.mulf %466, %468 : vector<16x64xf32>
    %cst_81 = arith.constant dense<0.000000e+00> : vector<16xf32>
    %470 = vector.multi_reduction <add>, %469, %cst_81 [1] : vector<16x64xf32> to vector<16xf32>
    %471 = vector.shape_cast %470 : vector<16xf32> to vector<16x1xf32>
    %cst_82 = arith.constant 6.400000e+01 : f32
    %472 = vector.broadcast %cst_82 : f32 to vector<16x1xf32>
    %473 = arith.divf %471, %472 : vector<16x1xf32>
    %474 = vector.broadcast %464 : vector<16x1xf32> to vector<16x64xf32>
    %475 = arith.subf %458, %474 : vector<16x64xf32>
    %cst_83 = arith.constant 9.99999974E-6 : f32
    %476 = vector.broadcast %cst_83 : f32 to vector<16x1xf32>
    %477 = arith.addf %473, %476 : vector<16x1xf32>
    %478 = math.rsqrt %477 : vector<16x1xf32>
    %479 = vector.broadcast %478 : vector<16x1xf32> to vector<16x64xf32>
    %480 = arith.mulf %475, %479 : vector<16x64xf32>
    %481 = vector.broadcast %459 : vector<1x64xf32> to vector<16x64xf32>
    %482 = arith.mulf %480, %481 : vector<16x64xf32>
    %483 = vector.broadcast %460 : vector<1x64xf32> to vector<16x64xf32>
    %484 = arith.addf %482, %483 : vector<16x64xf32>
    %c0_84 = arith.constant 0 : index
    %c0_85 = arith.constant 0 : index
    %485 = vector.load %arg9[%c0_84, %c0_85] : memref<64x128xf32, #tpu.memory_space<vmem>>, vector<64x128xf32>
    %cst_86 = arith.constant dense<0.000000e+00> : vector<16x128xf32>
    %486 = tpu.matmul %484, %485, %cst_86 {dimension_numbers = #tpu.dot_dimension_numbers<[1], [0], [0], [1], [0, 0, 1, 1], [], []>} : vector<16x64xf32>, vector<64x128xf32>, vector<16x128xf32> -> vector<16x128xf32>
    %c0_87 = arith.constant 0 : index
    %c0_88 = arith.constant 0 : index
    %487 = vector.load %arg10[%c0_87, %c0_88] : memref<1x128xf32, #tpu.memory_space<vmem>>, vector<1x128xf32>
    %488 = vector.broadcast %487 : vector<1x128xf32> to vector<16x128xf32>
    %489 = arith.addf %486, %488 : vector<16x128xf32>
    %cst_89 = arith.constant 5.000000e-01 : f32
    %490 = vector.broadcast %cst_89 : f32 to vector<16x128xf32>
    %491 = arith.mulf %490, %489 : vector<16x128xf32>
    %cst_90 = arith.constant 0.707106769 : f32
    %492 = vector.broadcast %cst_90 : f32 to vector<16x128xf32>
    %493 = arith.mulf %489, %492 : vector<16x128xf32>
    %cst_91 = arith.constant 0.000000e+00 : f32
    %494 = vector.broadcast %cst_91 : f32 to vector<16x128xf32>
    %495 = arith.cmpf olt, %493, %494 : vector<16x128xf32>
    %cst_92 = arith.constant -1.000000e+00 : f32
    %cst_93 = arith.constant 1.000000e+00 : f32
    %496 = vector.broadcast %cst_92 : f32 to vector<16x128xf32>
    %497 = vector.broadcast %cst_93 : f32 to vector<16x128xf32>
    %498 = arith.select %495, %496, %497 : vector<16x128xi1>, vector<16x128xf32>
    %499 = math.absf %493 : vector<16x128xf32>
    %cst_94 = arith.constant 0.327591091 : f32
    %500 = vector.broadcast %cst_94 : f32 to vector<16x128xf32>
    %501 = arith.mulf %500, %499 : vector<16x128xf32>
    %cst_95 = arith.constant 1.000000e+00 : f32
    %502 = vector.broadcast %cst_95 : f32 to vector<16x128xf32>
    %503 = arith.addf %502, %501 : vector<16x128xf32>
    %cst_96 = arith.constant 1.000000e+00 : f32
    %504 = vector.broadcast %cst_96 : f32 to vector<16x128xf32>
    %505 = arith.divf %504, %503 : vector<16x128xf32>
    %cst_97 = arith.constant 1.06140542 : f32
    %506 = vector.broadcast %cst_97 : f32 to vector<16x128xf32>
    %507 = arith.mulf %506, %505 : vector<16x128xf32>
    %cst_98 = arith.constant -1.45315206 : f32
    %508 = vector.broadcast %cst_98 : f32 to vector<16x128xf32>
    %509 = arith.addf %507, %508 : vector<16x128xf32>
    %510 = arith.mulf %509, %505 : vector<16x128xf32>
    %cst_99 = arith.constant 1.42141378 : f32
    %511 = vector.broadcast %cst_99 : f32 to vector<16x128xf32>
    %512 = arith.addf %510, %511 : vector<16x128xf32>
    %513 = arith.mulf %512, %505 : vector<16x128xf32>
    %cst_100 = arith.constant -0.284496725 : f32
    %514 = vector.broadcast %cst_100 : f32 to vector<16x128xf32>
    %515 = arith.addf %513, %514 : vector<16x128xf32>
    %516 = arith.mulf %515, %505 : vector<16x128xf32>
    %cst_101 = arith.constant 0.254829586 : f32
    %517 = vector.broadcast %cst_101 : f32 to vector<16x128xf32>
    %518 = arith.addf %516, %517 : vector<16x128xf32>
    %519 = arith.mulf %518, %505 : vector<16x128xf32>
    %cst_102 = arith.constant 0.000000e+00 : f32
    %520 = vector.broadcast %cst_102 : f32 to vector<16x128xf32>
    %521 = arith.subf %520, %499 : vector<16x128xf32>
    %522 = arith.mulf %521, %499 : vector<16x128xf32>
    %523 = math.exp %522 : vector<16x128xf32>
    %524 = arith.mulf %519, %523 : vector<16x128xf32>
    %cst_103 = arith.constant 1.000000e+00 : f32
    %525 = vector.broadcast %cst_103 : f32 to vector<16x128xf32>
    %526 = arith.subf %525, %524 : vector<16x128xf32>
    %527 = arith.mulf %498, %526 : vector<16x128xf32>
    %cst_104 = arith.constant 1.000000e+00 : f32
    %528 = vector.broadcast %cst_104 : f32 to vector<16x128xf32>
    %529 = arith.addf %528, %527 : vector<16x128xf32>
    %530 = arith.mulf %491, %529 : vector<16x128xf32>
    %c0_105 = arith.constant 0 : index
    %c0_106 = arith.constant 0 : index
    %531 = vector.load %arg11[%c0_105, %c0_106] : memref<128x64xf32, #tpu.memory_space<vmem>>, vector<128x64xf32>
    %cst_107 = arith.constant dense<0.000000e+00> : vector<16x64xf32>
    %532 = tpu.matmul %530, %531, %cst_107 {dimension_numbers = #tpu.dot_dimension_numbers<[1], [0], [0], [1], [0, 0, 1, 1], [], []>} : vector<16x128xf32>, vector<128x64xf32>, vector<16x64xf32> -> vector<16x64xf32>
    %c0_108 = arith.constant 0 : index
    %c0_109 = arith.constant 0 : index
    %533 = vector.load %arg12[%c0_108, %c0_109] : memref<1x64xf32, #tpu.memory_space<vmem>>, vector<1x64xf32>
    %534 = vector.broadcast %533 : vector<1x64xf32> to vector<16x64xf32>
    %535 = arith.addf %532, %534 : vector<16x64xf32>
    %536 = arith.addf %484, %535 : vector<16x64xf32>
    %c0_110 = arith.constant 0 : index
    %c0_111 = arith.constant 0 : index
    %537 = vector.load %arg13[%c0_110, %c0_111] : memref<1x64xf32, #tpu.memory_space<vmem>>, vector<1x64xf32>
    %c0_112 = arith.constant 0 : index
    %c0_113 = arith.constant 0 : index
    %538 = vector.load %arg14[%c0_112, %c0_113] : memref<1x64xf32, #tpu.memory_space<vmem>>, vector<1x64xf32>
    %cst_114 = arith.constant dense<0.000000e+00> : vector<16xf32>
    %539 = vector.multi_reduction <add>, %536, %cst_114 [1] : vector<16x64xf32> to vector<16xf32>
    %540 = vector.shape_cast %539 : vector<16xf32> to vector<16x1xf32>
    %cst_115 = arith.constant 6.400000e+01 : f32
    %541 = vector.broadcast %cst_115 : f32 to vector<16x1xf32>
    %542 = arith.divf %540, %541 : vector<16x1xf32>
    %543 = vector.broadcast %542 : vector<16x1xf32> to vector<16x64xf32>
    %544 = arith.subf %536, %543 : vector<16x64xf32>
    %545 = vector.broadcast %542 : vector<16x1xf32> to vector<16x64xf32>
    %546 = arith.subf %536, %545 : vector<16x64xf32>
    %547 = arith.mulf %544, %546 : vector<16x64xf32>
    %cst_116 = arith.constant dense<0.000000e+00> : vector<16xf32>
    %548 = vector.multi_reduction <add>, %547, %cst_116 [1] : vector<16x64xf32> to vector<16xf32>
    %549 = vector.shape_cast %548 : vector<16xf32> to vector<16x1xf32>
    %cst_117 = arith.constant 6.400000e+01 : f32
    %550 = vector.broadcast %cst_117 : f32 to vector<16x1xf32>
    %551 = arith.divf %549, %550 : vector<16x1xf32>
    %552 = vector.broadcast %542 : vector<16x1xf32> to vector<16x64xf32>
    %553 = arith.subf %536, %552 : vector<16x64xf32>
    %cst_118 = arith.constant 9.99999974E-6 : f32
    %554 = vector.broadcast %cst_118 : f32 to vector<16x1xf32>
    %555 = arith.addf %551, %554 : vector<16x1xf32>
    %556 = math.rsqrt %555 : vector<16x1xf32>
    %557 = vector.broadcast %556 : vector<16x1xf32> to vector<16x64xf32>
    %558 = arith.mulf %553, %557 : vector<16x64xf32>
    %559 = vector.broadcast %537 : vector<1x64xf32> to vector<16x64xf32>
    %560 = arith.mulf %558, %559 : vector<16x64xf32>
    %561 = vector.broadcast %538 : vector<1x64xf32> to vector<16x64xf32>
    %562 = arith.addf %560, %561 : vector<16x64xf32>
    %c0_119 = arith.constant 0 : index
    %c0_120 = arith.constant 0 : index
    %563 = vector.load %arg15[%c0_119, %c0_120] : memref<16x64xf32, #tpu.memory_space<vmem>>, vector<16x64xf32>
    tpu.vector_store %arg15[%c0_119, %c0_120], %562 {strides = array<i32>} : memref<16x64xf32, #tpu.memory_space<vmem>>, vector<16x64xf32>,
    return
  }
  func.func @transform_0(%arg0: i32) -> (i32, i32) {
    %c0_i32 = arith.constant 0 : i32
    %c0_i32_0 = arith.constant 0 : i32
    return %arg0, %c0_i32 : i32, i32
  }
  func.func @transform_1(%arg0: i32) -> (i32, i32) {
    %c0_i32 = arith.constant 0 : i32
    %c0_i32_0 = arith.constant 0 : i32
    %c0_i32_1 = arith.constant 0 : i32
    return %c0_i32, %c0_i32_0 : i32, i32
  }
  func.func @transform_2(%arg0: i32) -> (i32, i32) {
    %c0_i32 = arith.constant 0 : i32
    %c0_i32_0 = arith.constant 0 : i32
    %c0_i32_1 = arith.constant 0 : i32
    return %c0_i32, %c0_i32_0 : i32, i32
  }
  func.func @transform_3(%arg0: i32) -> (i32, i32) {
    %c0_i32 = arith.constant 0 : i32
    %c0_i32_0 = arith.constant 0 : i32
    %c0_i32_1 = arith.constant 0 : i32
    return %c0_i32, %c0_i32_0 : i32, i32
  }
  func.func @transform_4(%arg0: i32) -> (i32, i32) {
    %c0_i32 = arith.constant 0 : i32
    %c0_i32_0 = arith.constant 0 : i32
    %c0_i32_1 = arith.constant 0 : i32
    return %c0_i32, %c0_i32_0 : i32, i32
  }
  func.func @transform_5(%arg0: i32) -> (i32, i32) {
    %c0_i32 = arith.constant 0 : i32
    %c0_i32_0 = arith.constant 0 : i32
    %c0_i32_1 = arith.constant 0 : i32
    return %c0_i32, %c0_i32_0 : i32, i32
  }
  func.func @transform_6(%arg0: i32) -> (i32, i32) {
    %c0_i32 = arith.constant 0 : i32
    %c0_i32_0 = arith.constant 0 : i32
    %c0_i32_1 = arith.constant 0 : i32
    return %c0_i32, %c0_i32_0 : i32, i32
  }
  func.func @transform_7(%arg0: i32) -> (i32, i32) {
    %c0_i32 = arith.constant 0 : i32
    %c0_i32_0 = arith.constant 0 : i32
    %c0_i32_1 = arith.constant 0 : i32
    return %c0_i32, %c0_i32_0 : i32, i32
  }
  func.func @transform_8(%arg0: i32) -> (i32, i32) {
    %c0_i32 = arith.constant 0 : i32
    %c0_i32_0 = arith.constant 0 : i32
    %c0_i32_1 = arith.constant 0 : i32
    return %c0_i32, %c0_i32_0 : i32, i32
  }
  func.func @transform_9(%arg0: i32) -> (i32, i32) {
    %c0_i32 = arith.constant 0 : i32
    %c0_i32_0 = arith.constant 0 : i32
    %c0_i32_1 = arith.constant 0 : i32
    return %c0_i32, %c0_i32_0 : i32, i32
  }
  func.func @transform_10(%arg0: i32) -> (i32, i32) {
    %c0_i32 = arith.constant 0 : i32
    %c0_i32_0 = arith.constant 0 : i32
    %c0_i32_1 = arith.constant 0 : i32
    return %c0_i32, %c0_i32_0 : i32, i32
  }
  func.func @transform_11(%arg0: i32) -> (i32, i32) {
    %c0_i32 = arith.constant 0 : i32
    %c0_i32_0 = arith.constant 0 : i32
    %c0_i32_1 = arith.constant 0 : i32
    return %c0_i32, %c0_i32_0 : i32, i32
  }
  func.func @transform_12(%arg0: i32) -> (i32, i32) {
    %c0_i32 = arith.constant 0 : i32
    %c0_i32_0 = arith.constant 0 : i32
    %c0_i32_1 = arith.constant 0 : i32
    return %c0_i32, %c0_i32_0 : i32, i32
  }
  func.func @transform_13(%arg0: i32) -> (i32, i32) {
    %c0_i32 = arith.constant 0 : i32
    %c0_i32_0 = arith.constant 0 : i32
    %c0_i32_1 = arith.constant 0 : i32
    return %c0_i32, %c0_i32_0 : i32, i32
  }
  func.func @transform_14(%arg0: i32) -> (i32, i32) {
    %c0_i32 = arith.constant 0 : i32
    %c0_i32_0 = arith.constant 0 : i32
    return %arg0, %c0_i32 : i32, i32
  }
}

</mosaic_0001>

<bundles_post_ra>
// kernel: tpu_custom_call.1
= control target key start
LH: loop header
LB: loop body
LE: loop exit
PB: predicated region body
PF: predicated region fallthrough
CT: control target
= control target key end

     0   :  { %19 = vsyncpa [#allocation4], 0  ;;  %s4210_s0 = inlined_call_operand.vmem [shape: f32[16,64], index: 0, kind: input, shape index: {}]   ;;  %s4211_s1 = inlined_call_operand.vmem [shape: f32[64,192], index: 1, kind: input, shape index: {}]   ;;  %s4212_s2 = inlined_call_operand.vmem [shape: f32[1,192], index: 2, kind: input, shape index: {}]   ;;  %s4213_s3 = inlined_call_operand.vmem [shape: f32[64,64], index: 3, kind: input, shape index: {}]   ;;  %s4214_s4 = inlined_call_operand.vmem [shape: f32[1,64], index: 4, kind: input, shape index: {}]   ;;  %s4215_s5 = inlined_call_operand.vmem [shape: f32[16,8], index: 5, kind: input, shape index: {}]   ;;  %s4216_s6 = inlined_call_operand.vmem [shape: f32[1,64], index: 6, kind: input, shape index: {}]   ;;  %s4217_s7 = inlined_call_operand.vmem [shape: f32[1,64], index: 7, kind: input, shape index: {}]   ;;  %s4218_s8 = inlined_call_operand.hbm [shape: f32[64,128], index: 8, kind: input, shape index: {}]   ;;  %s4219_s9 = inlined_call_operand.vmem [shape: f32[1,128], index: 9, kind: input, shape index: {}]   ;;  %s4220_s10 = inlined_call_operand.vmem [shape: f32[128,64], index: 10, kind: input, shape index: {}]   ;;  %s4221_s11 = inlined_call_operand.vmem [shape: f32[1,64], index: 11, kind: input, shape index: {}]   ;;  %s4222_s12 = inlined_call_operand.vmem [shape: f32[1,64], index: 12, kind: input, shape index: {}]   ;;  %s4223_s13 = inlined_call_operand.vmem [shape: f32[1,64], index: 13, kind: input, shape index: {}]   ;;  %s4224_s14 = inlined_call_operand.hbm [shape: f32[16,64], index: 14, kind: output, shape index: {}]  }
   0x1   :  { %20 = vsyncpa [#allocation5], 0  ;;  %s3516_s29 = smov [#allocation3]  }
   0x2   :  { %s42_s30 = sshll.u32 %s3516_s29, 4  ;;  %s43_s30 = int_to_ptr.vmem [resolvable:$true] %s42_s30 }
   0x3   :  { %s3480_s15 = scalar_lea.vmem %s43_s30, 1024  ;;  %p3485_p1 = scmp.lt.s32.totalorder %s43_s30, %s43_s30 }
   0x4   :  { %p3481_p0 = scmp.ne.s32.totalorder %s43_s30, %s3480_s15  ;;  %p3486_p2 = scmp.lt.s32.totalorder %s3480_s15, %s3480_s15 }
   0x6   :  { %p3487_p3 = por %p3486_p2, %p3485_p1 }
   0x8   :  { %p3488_p4 = pnand %p3487_p3, %p3481_p0 }
   0xa   :  { %3491 = shalt.err (!%p3488_p4)
}
   0xb   :  { %s3517_s16 = smov 128   ;;  %s3518_s17 = smov 8  }
   0xc   :  { %48 = dma.hbm_to_vmem [thread:$0]  %s4218_s8, 1024, %s43_s30, [#allocation4], %s3517_s16, %s3517_s16, %s3518_s17  }
   0xd   :  { %3512 = dma.done.wait [#allocation4], 1024  }
   0xe   :  { %3513 = vsyncadd [#allocation4], 4294966272  ;;  %v3519_v0 = vmov 0.0   ;;  %v79_v1 = vld [vmem:[%s4211_s1 + $0x78] sm:$0xff]  ;;  %v78_v2 = vld [vmem:[%s4211_s1 + $0x70] sm:$0xff]  ;;  %vm92_vm0 = vcmask 523264   ;;  %v82_v20 = vlaneseq }
   0xf   :  { %163 = vmatprep.mubr.f32.mxu0 %v3519_v0  ;;  %3124 = vmatprep.subr.mxu1 %v3519_v0  ;;  %v77_v3 = vld [vmem:[%s4211_s1 + $0x68] sm:$0xff]  ;;  %v76_v4 = vld [vmem:[%s4211_s1 + $0x60] sm:$0xff]  ;;  %v75_v5 = vld [vmem:[%s4211_s1 + $0x58] sm:$0xff]  ;;  %vm3520_vm1 = vmmov 0   ;;  %v3521_v24 = vmov 1   ;;  %v3522_v25 = vmov 0  }
  0x10   :  { %115 = vmatprep.subr.mxu0 %v79_v1  ;;  %v74_v6 = vld [vmem:[%s4211_s1 + $0x50] sm:$0xff]  ;;  %v73_v7 = vld [vmem:[%s4211_s1 + $0x48] sm:$0xff]  ;;  %v72_v8 = vld [vmem:[%s4211_s1 + $0x40] sm:$0xff]  ;;  %3128 = vmatprep.mubr.msk.f32.mxu1 %vm3520_vm1, %v3519_v0  ;;  %v83_v21 = vshrl.u32 %v82_v20, 7  ;;  %vm208_vm2 = vcmask 130048   ;;  %s3523_s28 = smov 64  }
  0x11   :  { %116 = vmatpush1.msra.mxu0 %v78_v2  ;;  %v71_v9 = vld [vmem:[%s4211_s1 + $0x38] sm:$0xff]  ;;  %v70_v10 = vld [vmem:[%s4211_s1 + $0x30] sm:$0xff]  ;;  %v69_v11 = vld [vmem:[%s4211_s1 + $0x28] sm:$0xff]  ;;  %3356 = vset.pattern.permute.xlu1 %v3521_v24  ;;  %v3524_v36 = vmov 2   ;;  %v3525_v37 = vmov 4   ;;  %v3526_v38 = vmov 3  }
  0x12   :  { %117 = vmatprep.subr.mxu0 %v77_v3  ;;  %v68_v12 = vld [vmem:[%s4211_s1 + $0x20] sm:$0xff]  ;;  %v67_v13 = vld [vmem:[%s4211_s1 + $0x18] sm:$0xff]  ;;  %v66_v14 = vld [vmem:[%s4211_s1 + $0x10] sm:$0xff]  ;;  %v84_v22 = vsub.s32 0, %v83_v21  ;;  %3355 = vset.pattern.permute.xlu0 %v3522_v25  ;;  %v88_v29 = vsub.s32 1, %v83_v21  ;;  %v3527_v39 = vmov 7  }
  0x13   :  { %118 = vmatpush1.msra.mxu0 %v76_v4  ;;  %v65_v15 = vld [vmem:[%s4211_s1 + $0x8] sm:$0xff]  ;;  %v64_v16 = vld [vmem:[%s4211_s1] sm:$0xff]  ;;  %v3528_v40 = vmov 5   ;;  %v3529_v41 = vmov 6   ;;  %v179_v42 = vand.u32 127, %v82_v20  ;;  %vm406_vm11 = vcmask 64512  }
  0x14   :  { %119 = vmatprep.subr.mxu0 %v75_v5  ;;  %v62_v17 = vld [vmem:[%s4210_s0] sm:$0xff]  ;;  %v3678_v18 = vld [vmem:[%s4215_s5 + $0x8] sm:$0xff]  ;;  %s3531_s29 = smov 48   ;;  %s3532_s30 = smov 96   ;;  %vm782_vm12 = vcmask 261248   ;;  %vm1073_vm13 = vcmask 392448  }
  0x15   :  { %120 = vmatpush1.msra.mxu0 %v74_v6  ;;  %3125 = vmatpush3.msra.mxu1 %v3678_v18  ;;  %v3685_v19 = vld [vmem:[%s4215_s5] sm:$0xff]  ;;  %v180_v43 = vsub.s32 %v179_v42, %v83_v21  ;;  %s3533_s15 = smov 32   ;;  %s3534_s20 = smov 80   ;;  %vm1364_vm14 = vcmask 523648  }
  0x16   :  { %121 = vmatprep.subr.mxu0 %v73_v7  ;;  %3126 = vmatprep.subr.mxu1 %v3519_v0  ;;  %v80_v23 = vld [vmem:[%s4212_s2] sm:$0x3]  ;;  %s3530_s2 = smov 112   ;;  %s3535_s21 = smov 16  }
  0x17   :  { %122 = vmatpush1.msra.mxu0 %v72_v8  ;;  %3127 = vmatpush3.msra.mxu1 %v3685_v19  ;;  %v3696_v26 = vrot.slane %v80_v23, %v84_v22  ;;  %v3707_v30 = vrot.slane %v80_v23, %v88_v29  ;;  %v181_v45 = vadd.s32 7, %v180_v43 }
  0x18   :  { %123 = vmatprep.subr.mxu0 %v71_v9  ;;  %3131 = vmatprep.subr.mxu1 %v3519_v0 }
  0x19   :  { %124 = vmatpush1.msra.mxu0 %v70_v10  ;;  %vm185_vm3 = vcmp.eq.s32.totalorder %v181_v45, 1  ;;  %vm182_vm4 = vcmp.eq.s32.totalorder %v181_v45, 0  ;;  %vm188_vm5 = vcmp.eq.s32.totalorder %v181_v45, 2  ;;  %vm191_vm6 = vcmp.eq.s32.totalorder %v181_v45, 3 }
  0x1a   :  { %125 = vmatprep.subr.mxu0 %v69_v11  ;;  %v3729_v48 = vsel %vm185_vm3, 1.0, %v3519_v0  ;;  %v3732_v49 = vsel %vm182_vm4, 1.0, %v3519_v0  ;;  %v3735_v51 = vsel %vm188_vm5, 1.0, %v3519_v0  ;;  %v3741_v56 = vsel %vm191_vm6, 1.0, %v3519_v0 }
  0x1b   :  { %126 = vmatpush1.msra.mxu0 %v68_v12  ;;  %vm194_vm7 = vcmp.eq.s32.totalorder %v181_v45, 4  ;;  %vm197_vm8 = vcmp.eq.s32.totalorder %v181_v45, 5  ;;  %vm200_vm9 = vcmp.eq.s32.totalorder %v181_v45, 6  ;;  %vm203_vm10 = vcmp.eq.s32.totalorder %v181_v45, 7 }
  0x1c   :  { %127 = vmatprep.subr.mxu0 %v67_v13  ;;  %v3745_v61 = vsel %vm194_vm7, 1.0, %v3519_v0  ;;  %v3748_v1 = vsel %vm197_vm8, 1.0, %v3519_v0  ;;  %v3753_v6 = vsel %vm200_vm9, 1.0, %v3519_v0  ;;  %v3756_v7 = vsel %vm203_vm10, 1.0, %v3519_v0 }
  0x1d   :  { %128 = vmatpush1.msra.mxu0 %v66_v14 }
  0x1e   :  { %129 = vmatprep.subr.mxu0 %v65_v15 }
  0x1f   :  { %130 = vmatpush1.msra.mxu0 %v64_v16 }
  0x20   :  { %2977 = vmatmul.mubr.msk.f32.vlgmr.msra.gmra.mxu0 %vm92_vm0, %v62_v17  ;;  %3153 = vmatprep.subr.mxu0 %v3519_v0 }
  0x21   :  { %169 = vmatprep.mubr.f32.mxu0 %v3519_v0 }
  0xe0   :  { %v165_v27 = vpop.f32.mrf.mxu0 }
  0xe1   :  { %v3699_v28 = vadd.f32 %v165_v27, %v3696_v26 }
  0xe2   :  { %v167_v31 = vpop.f32.mrf.mxu0 }
  0xe3   :  { %330 = vrot.lane.b32.xlu0 %v3699_v28, %s3523_s28  ;;  %3129 = vmatmul.mubr.msk.f32.vlgmr.msra.gmra.mxu1 %vm208_vm2, %v3699_v28  ;;  %v3712_v33 = vadd.f32 %v167_v31, %v3707_v30 }
  0xe4   :  { %3133 = vmatprep.mubr.msk.f32.mxu1 %vm3520_vm1, %v3519_v0 }
 0x155   :  { %v331_v32 = vpop.permute.xlu0 %330 }
 0x156   :  { %3132 = vmatpush3.xpose.msk.msra.mxu1 %vm208_vm2, %v331_v32 }
 0x157   :  { %3136 = vmatprep.subr.mxu1 %v3519_v0 }
 0x159   :  { %3134 = vmatmul.mubr.msk.f32.vlgmr.msra.gmra.mxu1 %vm208_vm2, %v3699_v28 }
 0x15a   :  { %3137 = vmatpush3.msra.mxu1 %v3712_v33  ;;  %3138 = vmatprep.mubr.msk.f32.mxu1 %vm3520_vm1, %v3519_v0 }
 0x15b   :  { %3141 = vmatprep.subr.mxu1 %v3519_v0 }
 0x1a3   :  { %v278_v34 = vpop.f32.mrf.mxu1 }
 0x1a4   :  { %289 = vperm.xlu1 %3356, %v278_v34   ;;  %284 = vperm.xlu0 %3355, %v278_v34  }
 0x1a5   :  { %v3130_v35 = vpop.f32.mrf.mxu1 }
 0x1a8   :  { %3357 = vset.pattern.permute.xlu1 %v3524_v36  ;;  %3359 = vset.pattern.permute.xlu0 %v3525_v37 }
 0x1a9   :  { %295 = vperm.xlu1 %3357, %v278_v34   ;;  %307 = vperm.xlu0 %3359, %v278_v34  }
 0x1ad   :  { %3358 = vset.pattern.permute.xlu1 %v3526_v38  ;;  %3362 = vset.pattern.permute.xlu0 %v3527_v39 }
 0x1ae   :  { %301 = vperm.xlu1 %3358, %v278_v34   ;;  %325 = vperm.xlu0 %3362, %v278_v34  }
 0x1b2   :  { %3360 = vset.pattern.permute.xlu1 %v3528_v40  ;;  %3365 = vset.pattern.permute.xlu0 %v3524_v36 }
 0x1b3   :  { %313 = vperm.xlu1 %3360, %v278_v34  }
 0x1b7   :  { %3361 = vset.pattern.permute.xlu1 %v3529_v41 }
 0x1b8   :  { %319 = vperm.xlu1 %3361, %v278_v34  }
 0x1bc   :  { %3363 = vset.pattern.permute.xlu1 %v3522_v25 }
 0x219   :  { %v400_v44 = vpop.f32.mrf.mxu1 }
 0x21a   :  { %v404_v14 = vmul.f32 0.25, %v400_v44 }
 0x21b   :  { %v3135_v46 = vpop.f32.mrf.mxu1 }
 0x21f   :  { %v290_v47 = vpop.permute.xlu1 %289  ;;  %v285_v50 = vpop.permute.xlu0 %284 }
 0x220   :  { %v292_v52 = vmul.f32 %v3729_v48, %v290_v47  ;;  %v287_v53 = vmul.f32 %v3732_v49, %v285_v50 }
 0x222   :  { %v293_v57 = vadd.f32 %v292_v52, %v287_v53 }
 0x224   :  { %v296_v54 = vpop.permute.xlu1 %295  ;;  %v308_v62 = vpop.permute.xlu0 %307 }
 0x225   :  { %v298_v55 = vmul.f32 %v3735_v51, %v296_v54  ;;  %v310_v2 = vmul.f32 %v3745_v61, %v308_v62 }
 0x227   :  { %v299_v59 = vadd.f32 %v298_v55, %v293_v57 }
 0x229   :  { %v302_v58 = vpop.permute.xlu1 %301  ;;  %v326_v8 = vpop.permute.xlu0 %325 }
 0x22a   :  { %v304_v60 = vmul.f32 %v3741_v56, %v302_v58  ;;  %v328_v12 = vmul.f32 %v3756_v7, %v326_v8 }
 0x22c   :  { %v305_v63 = vadd.f32 %v304_v60, %v299_v59 }
 0x22e   :  { %v314_v3 = vpop.permute.xlu1 %313  ;;  %v311_v4 = vadd.f32 %v310_v2, %v305_v63 }
 0x22f   :  { %v316_v5 = vmul.f32 %v3748_v1, %v314_v3 }
 0x231   :  { %v317_v10 = vadd.f32 %v316_v5, %v311_v4 }
 0x233   :  { %v320_v9 = vpop.permute.xlu1 %319 }
 0x234   :  { %v322_v11 = vmul.f32 %v3753_v6, %v320_v9 }
 0x236   :  { %v323_v13 = vadd.f32 %v322_v11, %v317_v10 }
 0x238   :  { %v329_v15 = vadd.f32 %v328_v12, %v323_v13 }
 0x23a   :  { %v405_v16 = vadd.f32 %v404_v14, %v329_v15 }
 0x23c   :  { %v407_v17 = vsel %vm406_vm11, %v405_v16, -inf }
 0x23d   :  { %408 = vmax.xlane.f32.xlu1 %v407_v17 }
 0x24e   :  { %492 = vrot.lane.b32.xlu1 %v3699_v28, %s3530_s2 }
 0x2c6   :  { %v409_v20 = vpop.xlane.xlu1 %408 }
 0x2c7   :  { %v410_v21 = vsub.f32 %v405_v16, %v409_v20 }
 0x2c9   :  { %v411_v22 = vmul.f32 1.442695, %v410_v21 }
 0x2ca   :  { %v493_v34 = vpop.permute.xlu1 %492 }
 0x2cb   :  { %3420 = vpow2.f32 %v411_v22 }
 0x2d8   :  { %v3421_v23 = vpop.eup %3420 }
 0x2d9   :  { %v413_v27 = vsel %vm406_vm11, %v3421_v23, 0.0 }
 0x2da   :  { %414 = vadd.xlane.f32.xlu0 %v413_v27 }
 0x2f0   :  { %614 = vrot.lane.b32.xlu0 %v3699_v28, %s3531_s29 }
 0x363   :  { %v415_v29 = vpop.xlane.xlu0 %414 }
 0x364   :  { %3422 = vrcp.f32 %v415_v29 }
 0x367   :  { %v615_v35 = vpop.permute.xlu0 %614 }
 0x371   :  { %v3423_v31 = vpop.eup %3422 }
 0x372   :  { %v417_v32 = vmul.f32 %v3423_v31, %v3421_v23 }
 0x374   :  { %3139 = vmatmul.mubr.msk.f32.vlgmr.msra.gmra.mxu1 %vm406_vm11, %v417_v32 }
 0x375   :  { %3142 = vmatpush3.msra.mxu1 %v3678_v18  ;;  %3145 = vmatprep.mubr.msk.f32.mxu1 %vm3520_vm1, %v3519_v0 }
 0x376   :  { %3143 = vmatprep.subr.mxu1 %v3519_v0 }
 0x377   :  { %3144 = vmatpush3.msra.mxu1 %v3685_v19 }
 0x378   :  { %3148 = vmatprep.subr.mxu1 %v3519_v0  ;;  %3146 = vmatmul.mubr.msk.f32.vlgmr.msra.gmra.mxu1 %vm208_vm2, %v493_v34 }
 0x379   :  { %3149 = vmatpush3.xpose.msk.msra.mxu1 %vm208_vm2, %v615_v35  ;;  %3150 = vmatprep.mubr.msk.f32.mxu1 %vm3520_vm1, %v3519_v0 }
 0x37a   :  { %3158 = vmatprep.subr.mxu1 %v3519_v0 }
 0x37c   :  { %3151 = vmatmul.mubr.msk.f32.vlgmr.msra.gmra.mxu1 %vm208_vm2, %v493_v34  ;;  %v63_v34 = vld [vmem:[%s4210_s0 + $0x8] sm:$0xff] }
 0x37d   :  { %3159 = vmatpush3.msra.mxu1 %v3678_v18  ;;  %3162 = vmatprep.mubr.msk.f32.mxu1 %vm3520_vm1, %v3519_v0 }
 0x37e   :  { %3160 = vmatprep.subr.mxu1 %v3519_v0  ;;  %2978 = vmatmul.mubr.msk.f32.gmra.mxu0 %vm92_vm0, %v63_v34 }
 0x37f   :  { %3161 = vmatpush3.msra.mxu1 %v3685_v19  ;;  %3155 = vmatprep.mubr.msk.f32.mxu0 %vm3520_vm1, %v3519_v0 }
 0x380   :  { %3170 = vmatprep.subr.mxu1 %v3519_v0 }
 0x434   :  { %v487_v42 = vpop.f32.mrf.mxu1 }
 0x435   :  { %491 = vst.msk [vmem:[#allocation2] sm:$0xff] %vm208_vm2, %v487_v42 }
 0x436   :  { %v3140_v43 = vpop.f32.mrf.mxu1 }
 0x438   :  { %v562_v44 = vpop.f32.mrf.mxu1 }
 0x439   :  { %579 = vperm.xlu0 %3365, %v562_v44   ;;  %568 = vperm.xlu1 %3363, %v562_v44  }
 0x43a   :  { %v3147_v45 = vpop.f32.mrf.mxu1 }
 0x43c   :  { %v684_v46 = vpop.f32.mrf.mxu1 }
 0x43d   :  { %3368 = vset.pattern.permute.xlu0 %v3528_v40  ;;  %3364 = vset.pattern.permute.xlu1 %v3521_v24  ;;  %v688_v15 = vmul.f32 0.25, %v684_v46 }
 0x43e   :  { %597 = vperm.xlu0 %3368, %v562_v44   ;;  %573 = vperm.xlu1 %3364, %v562_v44   ;;  %v3152_v47 = vpop.f32.mrf.mxu1 }
 0x442   :  { %3366 = vset.pattern.permute.xlu1 %v3526_v38  ;;  %3371 = vset.pattern.permute.xlu0 %v3522_v25 }
 0x443   :  { %585 = vperm.xlu1 %3366, %v562_v44  }
 0x447   :  { %3367 = vset.pattern.permute.xlu1 %v3525_v37 }
 0x448   :  { %591 = vperm.xlu1 %3367, %v562_v44  }
 0x44c   :  { %3369 = vset.pattern.permute.xlu1 %v3529_v41 }
 0x44d   :  { %603 = vperm.xlu1 %3369, %v562_v44  }
 0x451   :  { %3370 = vset.pattern.permute.xlu1 %v3527_v39 }
 0x452   :  { %609 = vperm.xlu1 %3370, %v562_v44  }
 0x456   :  { %784 = vrot.lane.b32.xlu1 %v3699_v28, %s3532_s30 }
 0x457   :  { %3372 = vset.pattern.permute.xlu1 %v3521_v24 }
 0x4b4   :  { %v569_v50 = vpop.permute.xlu1 %568  ;;  %v580_v55 = vpop.permute.xlu0 %579 }
 0x4b5   :  { %v571_v53 = vmul.f32 %v3732_v49, %v569_v50  ;;  %v582_v58 = vmul.f32 %v3735_v51, %v580_v55 }
 0x4b9   :  { %v574_v52 = vpop.permute.xlu1 %573  ;;  %v598_v4 = vpop.permute.xlu0 %597 }
 0x4ba   :  { %v576_v54 = vmul.f32 %v3729_v48, %v574_v52  ;;  %v600_v8 = vmul.f32 %v3748_v1, %v598_v4 }
 0x4bc   :  { %v577_v57 = vadd.f32 %v576_v54, %v571_v53 }
 0x4be   :  { %v586_v59 = vpop.permute.xlu1 %585  ;;  %v583_v60 = vadd.f32 %v582_v58, %v577_v57 }
 0x4bf   :  { %v588_v62 = vmul.f32 %v3741_v56, %v586_v59 }
 0x4c1   :  { %v589_v2 = vadd.f32 %v588_v62, %v583_v60 }
 0x4c3   :  { %v592_v63 = vpop.permute.xlu1 %591 }
 0x4c4   :  { %v594_v3 = vmul.f32 %v3745_v61, %v592_v63 }
 0x4c6   :  { %v595_v5 = vadd.f32 %v594_v3, %v589_v2 }
 0x4c8   :  { %v604_v9 = vpop.permute.xlu1 %603  ;;  %v601_v10 = vadd.f32 %v600_v8, %v595_v5 }
 0x4c9   :  { %v606_v11 = vmul.f32 %v3753_v6, %v604_v9  ;;  %v171_v9 = vpop.f32.mrf.mxu0 }
 0x4cb   :  { %v607_v13 = vadd.f32 %v606_v11, %v601_v10 }
 0x4cd   :  { %v610_v12 = vpop.permute.xlu1 %609 }
 0x4ce   :  { %v612_v14 = vmul.f32 %v3756_v7, %v610_v12  ;;  %v173_v12 = vpop.f32.mrf.mxu0 }
 0x4d0   :  { %v613_v16 = vadd.f32 %v612_v14, %v607_v13 }
 0x4d1   :  { %v785_v17 = vpop.permute.xlu1 %784 }
 0x4d2   :  { %3163 = vmatmul.mubr.msk.f32.vlgmr.msra.gmra.mxu1 %vm208_vm2, %v785_v17  ;;  %v689_v20 = vadd.f32 %v688_v15, %v613_v16 }
 0x4d3   :  { %3172 = vmatprep.mubr.msk.f32.mxu1 %vm3520_vm1, %v3519_v0 }
 0x4d4   :  { %v690_v21 = vsel %vm406_vm11, %v689_v20, -inf }
 0x4d5   :  { %691 = vmax.xlane.f32.xlu0 %v690_v21 }
 0x4eb   :  { %702 = vrot.lane.b32.xlu0 %v3712_v33, %s3530_s2 }
 0x55e   :  { %v692_v22 = vpop.xlane.xlu0 %691 }
 0x55f   :  { %v693_v23 = vsub.f32 %v689_v20, %v692_v22 }
 0x561   :  { %v694_v27 = vmul.f32 1.442695, %v693_v23 }
 0x562   :  { %v703_v29 = vpop.permute.xlu0 %702 }
 0x563   :  { %3424 = vpow2.f32 %v694_v27  ;;  %3154 = vmatpush3.msra.mxu0 %v703_v29 }
 0x564   :  { %3165 = vmatprep.subr.mxu0 %v3519_v0 }
 0x570   :  { %v3425_v31 = vpop.eup %3424 }
 0x571   :  { %v696_v32 = vsel %vm406_vm11, %v3425_v31, 0.0 }
 0x572   :  { %697 = vadd.xlane.f32.xlu1 %v696_v32 }
 0x583   :  { %906 = vrot.lane.b32.xlu1 %v3699_v28, %s3533_s15 }
 0x592   :  { %v854_v35 = vpop.f32.mrf.mxu1 }
 0x593   :  { %865 = vperm.xlu1 %3372, %v854_v35   ;;  %860 = vperm.xlu0 %3371, %v854_v35  }
 0x594   :  { %v3164_v42 = vpop.f32.mrf.mxu1 }
 0x597   :  { %3374 = vset.pattern.permute.xlu1 %v3526_v38  ;;  %3373 = vset.pattern.permute.xlu0 %v3524_v36 }
 0x598   :  { %877 = vperm.xlu1 %3374, %v854_v35   ;;  %871 = vperm.xlu0 %3373, %v854_v35  }
 0x59c   :  { %3375 = vset.pattern.permute.xlu1 %v3525_v37  ;;  %3376 = vset.pattern.permute.xlu0 %v3528_v40 }
 0x59d   :  { %883 = vperm.xlu1 %3375, %v854_v35   ;;  %889 = vperm.xlu0 %3376, %v854_v35  }
 0x5a1   :  { %3377 = vset.pattern.permute.xlu1 %v3529_v41  ;;  %3379 = vset.pattern.permute.xlu0 %v3522_v25 }
 0x5a2   :  { %895 = vperm.xlu1 %3377, %v854_v35  }
 0x5a6   :  { %3378 = vset.pattern.permute.xlu1 %v3527_v39 }
 0x5a7   :  { %901 = vperm.xlu1 %3378, %v854_v35  }
 0x5ab   :  { %1075 = vrot.lane.b32.xlu1 %v3699_v28, %s3534_s20 }
 0x5ac   :  { %3380 = vset.pattern.permute.xlu1 %v3521_v24 }
 0x5fb   :  { %v698_v43 = vpop.xlane.xlu1 %697 }
 0x5fc   :  { %3426 = vrcp.f32 %v698_v43 }
 0x5ff   :  { %v907_v46 = vpop.permute.xlu1 %906 }
 0x609   :  { %v3427_v44 = vpop.eup %3426 }
 0x60a   :  { %v700_v45 = vmul.f32 %v3427_v44, %v3425_v31 }
 0x60c   :  { %3156 = vmatmul.mubr.msk.f32.vlgmr.msra.gmra.mxu0 %vm406_vm11, %v700_v45 }
 0x60d   :  { %3166 = vmatpush3.xpose.msk.msra.mxu0 %vm208_vm2, %v907_v46  ;;  %3167 = vmatprep.mubr.msk.f32.mxu0 %vm3520_vm1, %v3519_v0 }
 0x60e   :  { %v866_v47 = vpop.permute.xlu1 %865  ;;  %3175 = vmatprep.subr.mxu0 %v3519_v0  ;;  %v861_v57 = vpop.permute.xlu0 %860 }
 0x60f   :  { %v868_v59 = vmul.f32 %v3729_v48, %v866_v47  ;;  %v863_v60 = vmul.f32 %v3732_v49, %v861_v57 }
 0x610   :  { %3168 = vmatmul.mubr.msk.f32.vlgmr.msra.gmra.mxu0 %vm208_vm2, %v785_v17 }
 0x611   :  { %3176 = vmatpush3.msra.mxu0 %v3678_v18  ;;  %3179 = vmatprep.mubr.msk.f32.mxu0 %vm3520_vm1, %v3519_v0  ;;  %v869_v63 = vadd.f32 %v868_v59, %v863_v60 }
 0x612   :  { %3177 = vmatprep.subr.mxu0 %v3519_v0 }
 0x613   :  { %v878_v50 = vpop.permute.xlu1 %877  ;;  %3178 = vmatpush3.msra.mxu0 %v3685_v19  ;;  %v872_v58 = vpop.permute.xlu0 %871 }
 0x614   :  { %3187 = vmatprep.subr.mxu0 %v3519_v0  ;;  %v874_v62 = vmul.f32 %v3735_v51, %v872_v58  ;;  %v880_v3 = vmul.f32 %v3741_v56, %v878_v50 }
 0x616   :  { %v875_v2 = vadd.f32 %v874_v62, %v869_v63 }
 0x618   :  { %v884_v52 = vpop.permute.xlu1 %883  ;;  %v881_v4 = vadd.f32 %v880_v3, %v875_v2  ;;  %v890_v8 = vpop.permute.xlu0 %889 }
 0x619   :  { %v886_v5 = vmul.f32 %v3745_v61, %v884_v52  ;;  %v892_v11 = vmul.f32 %v3748_v1, %v890_v8 }
 0x61b   :  { %v887_v10 = vadd.f32 %v886_v5, %v881_v4 }
 0x61d   :  { %v896_v53 = vpop.permute.xlu1 %895  ;;  %v893_v13 = vadd.f32 %v892_v11, %v887_v10 }
 0x61e   :  { %v898_v14 = vmul.f32 %v3753_v6, %v896_v53  ;;  %v3884_v53 = vadd.f32 %v171_v9, %v3696_v26 }
 0x620   :  { %v899_v20 = vadd.f32 %v898_v14, %v893_v13 }
 0x622   :  { %v902_v54 = vpop.permute.xlu1 %901 }
 0x623   :  { %v904_v16 = vmul.f32 %v3756_v7, %v902_v54  ;;  %v3888_v54 = vadd.f32 %v173_v12, %v3707_v30 }
 0x625   :  { %v905_v22 = vadd.f32 %v904_v16, %v899_v20 }
 0x626   :  { %v3842_v55 = vpop.permute.xlu1 %1075 }
 0x627   :  { %3180 = vmatmul.mubr.msk.f32.vlgmr.msra.gmra.mxu0 %vm208_vm2, %v3842_v55 }
 0x628   :  { %3189 = vmatprep.mubr.msk.f32.mxu0 %vm3520_vm1, %v3519_v0 }
 0x6cc   :  { %v3855_v15 = vpop.f32.mrf.mxu0 }
 0x6ce   :  { %v3157_v17 = vpop.f32.mrf.mxu0 }
 0x6d0   :  { %v976_v21 = vpop.f32.mrf.mxu0 }
 0x6d1   :  { %v980_v23 = vmul.f32 0.25, %v976_v21 }
 0x6d2   :  { %v3169_v27 = vpop.f32.mrf.mxu0 }
 0x6d3   :  { %v981_v29 = vadd.f32 %v980_v23, %v905_v22 }
 0x6d5   :  { %v982_v31 = vsel %vm406_vm11, %v981_v29, -inf }
 0x6d6   :  { %983 = vmax.xlane.f32.xlu0 %v982_v31 }
 0x6e7   :  { %v1145_v32 = vpop.f32.mrf.mxu0 }
 0x6e9   :  { %v3181_v34 = vpop.f32.mrf.mxu0 }
 0x6ec   :  { %993 = vrot.lane.b32.xlu0 %v3712_v33, %s3532_s30 }
 0x6f0   :  { %1151 = vperm.xlu0 %3379, %v1145_v32  }
 0x6f4   :  { %3381 = vset.pattern.permute.xlu0 %v3524_v36 }
 0x6f5   :  { %1162 = vperm.xlu0 %3381, %v1145_v32  }
 0x6f9   :  { %3384 = vset.pattern.permute.xlu0 %v3528_v40 }
 0x6fa   :  { %1180 = vperm.xlu0 %3384, %v1145_v32  }
 0x6fe   :  { %3387 = vset.pattern.permute.xlu0 %v3522_v25 }
 0x75f   :  { %v984_v35 = vpop.xlane.xlu0 %983 }
 0x760   :  { %v985_v42 = vsub.f32 %v981_v29, %v984_v35 }
 0x762   :  { %v986_v43 = vmul.f32 1.442695, %v985_v42 }
 0x763   :  { %v994_v44 = vpop.permute.xlu0 %993 }
 0x764   :  { %3428 = vpow2.f32 %v986_v43  ;;  %3171 = vmatpush3.msra.mxu1 %v994_v44 }
 0x765   :  { %3182 = vmatprep.subr.mxu1 %v3519_v0 }
 0x771   :  { %v3429_v45 = vpop.eup %3428 }
 0x772   :  { %v988_v46 = vsel %vm406_vm11, %v3429_v45, 0.0 }
 0x773   :  { %989 = vadd.xlane.f32.xlu1 %v988_v46 }
 0x784   :  { %1197 = vrot.lane.b32.xlu1 %v3699_v28, %s3535_s21 }
 0x788   :  { %1156 = vperm.xlu1 %3380, %v1145_v32  }
 0x78c   :  { %3382 = vset.pattern.permute.xlu1 %v3526_v38 }
 0x78d   :  { %1168 = vperm.xlu1 %3382, %v1145_v32  }
 0x791   :  { %3383 = vset.pattern.permute.xlu1 %v3525_v37 }
 0x792   :  { %1174 = vperm.xlu1 %3383, %v1145_v32  }
 0x796   :  { %3385 = vset.pattern.permute.xlu1 %v3529_v41 }
 0x797   :  { %1186 = vperm.xlu1 %3385, %v1145_v32  }
 0x79b   :  { %3386 = vset.pattern.permute.xlu1 %v3527_v39 }
 0x79c   :  { %1192 = vperm.xlu1 %3386, %v1145_v32  }
 0x7a0   :  { %3388 = vset.pattern.permute.xlu1 %v3521_v24 }
 0x7fc   :  { %v990_v47 = vpop.xlane.xlu1 %989 }
 0x7fd   :  { %3430 = vrcp.f32 %v990_v47 }
 0x800   :  { %v1198_v28 = vpop.permute.xlu1 %1197 }
 0x804   :  { %v1157_v26 = vpop.permute.xlu1 %1156 }
 0x805   :  { %v1159_v30 = vmul.f32 %v3729_v48, %v1157_v26 }
 0x808   :  { %v1169_v57 = vpop.permute.xlu1 %1168 }
 0x809   :  { %v1171_v3 = vmul.f32 %v3741_v56, %v1169_v57 }
 0x80a   :  { %v3431_v50 = vpop.eup %3430 }
 0x80b   :  { %v992_v52 = vmul.f32 %v3431_v50, %v3429_v45 }
 0x80d   :  { %3173 = vmatmul.mubr.msk.f32.vlgmr.msra.gmra.mxu1 %vm406_vm11, %v992_v52  ;;  %v1175_v62 = vpop.permute.xlu1 %1174 }
 0x80e   :  { %3183 = vmatpush3.xpose.msk.msra.mxu1 %vm208_vm2, %v1198_v28  ;;  %3184 = vmatprep.mubr.msk.f32.mxu1 %vm3520_vm1, %v3519_v0  ;;  %v1177_v4 = vmul.f32 %v3745_v61, %v1175_v62 }
 0x80f   :  { %3192 = vmatprep.subr.mxu1 %v3519_v0 }
 0x811   :  { %3185 = vmatmul.mubr.msk.f32.vlgmr.msra.gmra.mxu1 %vm208_vm2, %v3842_v55  ;;  %v1152_v55 = vpop.permute.xlu0 %1151 }
 0x812   :  { %3193 = vmatpush3.msra.mxu1 %v3678_v18  ;;  %3196 = vmatprep.mubr.msk.f32.mxu1 %vm3520_vm1, %v3519_v0  ;;  %v1154_v58 = vmul.f32 %v3732_v49, %v1152_v55  ;;  %v1187_v5 = vpop.permute.xlu1 %1186 }
 0x813   :  { %3194 = vmatprep.subr.mxu1 %v3519_v0  ;;  %v1189_v14 = vmul.f32 %v3753_v6, %v1187_v5 }
 0x814   :  { %3195 = vmatpush3.msra.mxu1 %v3685_v19  ;;  %v1160_v60 = vadd.f32 %v1159_v30, %v1154_v58 }
 0x815   :  { %3204 = vmatprep.subr.mxu1 %v3519_v0  ;;  %3197 = vmatmul.mubr.msk.f32.vlgmr.msra.gmra.mxu1 %vm208_vm2, %v3884_v53  ;;  %v1163_v59 = vpop.permute.xlu0 %1162 }
 0x816   :  { %3205 = vmatpush3.msra.mxu1 %v3888_v54  ;;  %3206 = vmatprep.mubr.msk.f32.mxu1 %vm3520_vm1, %v3519_v0  ;;  %v1165_v63 = vmul.f32 %v3735_v51, %v1163_v59 }
 0x817   :  { %3216 = vmatprep.subr.mxu1 %v3519_v0  ;;  %v1193_v12 = vpop.permute.xlu1 %1192 }
 0x818   :  { %v1166_v2 = vadd.f32 %v1165_v63, %v1160_v60  ;;  %v1195_v17 = vmul.f32 %v3756_v7, %v1193_v12 }
 0x819   :  { %v1181_v9 = vpop.permute.xlu0 %1180 }
 0x81a   :  { %v1172_v8 = vadd.f32 %v1171_v3, %v1166_v2  ;;  %v1183_v11 = vmul.f32 %v3748_v1, %v1181_v9 }
 0x81c   :  { %v1178_v10 = vadd.f32 %v1177_v4, %v1172_v8 }
 0x81e   :  { %v1184_v13 = vadd.f32 %v1183_v11, %v1178_v10 }
 0x820   :  { %v1190_v21 = vadd.f32 %v1189_v14, %v1184_v13 }
 0x822   :  { %v1196_v23 = vadd.f32 %v1195_v17, %v1190_v21 }
 0x8cd   :  { %v3905_v16 = vpop.f32.mrf.mxu1 }
 0x8cf   :  { %v3174_v20 = vpop.f32.mrf.mxu1 }
 0x8d1   :  { %v1267_v22 = vpop.f32.mrf.mxu1 }
 0x8d2   :  { %v1271_v27 = vmul.f32 0.25, %v1267_v22 }
 0x8d3   :  { %v3186_v29 = vpop.f32.mrf.mxu1 }
 0x8d4   :  { %v1272_v31 = vadd.f32 %v1271_v27, %v1196_v23 }
 0x8d5   :  { %v1435_v32 = vpop.f32.mrf.mxu1 }
 0x8d6   :  { %v1273_v34 = vsel %vm406_vm11, %v1272_v31, -inf }
 0x8d7   :  { %1274 = vmax.xlane.f32.xlu0 %v1273_v34  ;;  %v3198_v35 = vpop.f32.mrf.mxu1 }
 0x8ed   :  { %1284 = vrot.lane.b32.xlu0 %v3712_v33, %s3534_s20 }
 0x8f1   :  { %1441 = vperm.xlu0 %3387, %v1435_v32  }
 0x8f5   :  { %3390 = vset.pattern.permute.xlu0 %v3526_v38 }
 0x8f6   :  { %1458 = vperm.xlu0 %3390, %v1435_v32  }
 0x8fa   :  { %3393 = vset.pattern.permute.xlu0 %v3529_v41 }
 0x8fb   :  { %1476 = vperm.xlu0 %3393, %v1435_v32  }
 0x8ff   :  { %1648 = vrot.lane.b32.xlu0 %v3884_v53, %s3530_s2 }
 0x900   :  { %3395 = vset.pattern.permute.xlu0 %v3522_v25 }
 0x960   :  { %v1275_v42 = vpop.xlane.xlu0 %1274 }
 0x961   :  { %v1276_v43 = vsub.f32 %v1272_v31, %v1275_v42 }
 0x963   :  { %v1277_v44 = vmul.f32 1.442695, %v1276_v43 }
 0x964   :  { %v1285_v45 = vpop.permute.xlu0 %1284 }
 0x965   :  { %3432 = vpow2.f32 %v1277_v44  ;;  %3188 = vmatpush3.msra.mxu0 %v1285_v45 }
 0x966   :  { %3199 = vmatprep.subr.mxu0 %v3519_v0 }
 0x96c   :  { %v1442_v52 = vpop.permute.xlu0 %1441 }
 0x96d   :  { %v1444_v55 = vmul.f32 %v3732_v49, %v1442_v52 }
 0x971   :  { %v1459_v57 = vpop.permute.xlu0 %1458 }
 0x972   :  { %v3433_v33 = vpop.eup %3432  ;;  %v1461_v62 = vmul.f32 %v3741_v56, %v1459_v57 }
 0x973   :  { %v1279_v46 = vsel %vm406_vm11, %v3433_v33, 0.0 }
 0x974   :  { %1280 = vadd.xlane.f32.xlu1 %v1279_v46 }
 0x976   :  { %v1477_v5 = vpop.permute.xlu0 %1476 }
 0x977   :  { %v1479_v13 = vmul.f32 %v3753_v6, %v1477_v5 }
 0x97a   :  { %v1649_v12 = vpop.permute.xlu0 %1648 }
 0x985   :  { %1487 = vrot.lane.b32.xlu1 %v3884_v53, %s3523_s28 }
 0x989   :  { %1446 = vperm.xlu1 %3388, %v1435_v32  }
 0x98d   :  { %3389 = vset.pattern.permute.xlu1 %v3524_v36 }
 0x98e   :  { %1452 = vperm.xlu1 %3389, %v1435_v32  }
 0x992   :  { %3391 = vset.pattern.permute.xlu1 %v3525_v37 }
 0x993   :  { %1464 = vperm.xlu1 %3391, %v1435_v32  }
 0x997   :  { %3392 = vset.pattern.permute.xlu1 %v3528_v40 }
 0x998   :  { %1470 = vperm.xlu1 %3392, %v1435_v32  }
 0x99c   :  { %3394 = vset.pattern.permute.xlu1 %v3527_v39 }
 0x99d   :  { %1482 = vperm.xlu1 %3394, %v1435_v32  }
 0x9a1   :  { %3396 = vset.pattern.permute.xlu1 %v3521_v24 }
 0x9fd   :  { %v1281_v47 = vpop.xlane.xlu1 %1280 }
 0x9fe   :  { %3434 = vrcp.f32 %v1281_v47 }
 0xa01   :  { %v1488_v50 = vpop.permute.xlu1 %1487 }
 0xa05   :  { %v1447_v28 = vpop.permute.xlu1 %1446 }
 0xa06   :  { %v1449_v26 = vmul.f32 %v3729_v48, %v1447_v28 }
 0xa08   :  { %v1450_v58 = vadd.f32 %v1449_v26, %v1444_v55 }
 0xa09   :  { %v1453_v30 = vpop.permute.xlu1 %1452 }
 0xa0a   :  { %v1455_v59 = vmul.f32 %v3735_v51, %v1453_v30 }
 0xa0b   :  { %v3435_v60 = vpop.eup %3434 }
 0xa0c   :  { %v1456_v63 = vadd.f32 %v1455_v59, %v1450_v58  ;;  %v1283_v2 = vmul.f32 %v3435_v60, %v3433_v33 }
 0xa0e   :  { %3190 = vmatmul.mubr.msk.f32.vlgmr.msra.gmra.mxu0 %vm406_vm11, %v1283_v2  ;;  %v1465_v3 = vpop.permute.xlu1 %1464  ;;  %v1462_v4 = vadd.f32 %v1461_v62, %v1456_v63 }
 0xa0f   :  { %3200 = vmatpush3.xpose.msk.msra.mxu0 %vm208_vm2, %v1488_v50  ;;  %3201 = vmatprep.mubr.msk.f32.mxu0 %vm3520_vm1, %v3519_v0  ;;  %v1467_v8 = vmul.f32 %v3745_v61, %v1465_v3 }
 0xa10   :  { %3209 = vmatprep.subr.mxu0 %v3519_v0 }
 0xa11   :  { %v1468_v10 = vadd.f32 %v1467_v8, %v1462_v4 }
 0xa12   :  { %3202 = vmatmul.mubr.msk.f32.vlgmr.msra.gmra.mxu0 %vm208_vm2, %v3884_v53 }
 0xa13   :  { %3210 = vmatpush3.msra.mxu0 %v3678_v18  ;;  %v1471_v9 = vpop.permute.xlu1 %1470  ;;  %3213 = vmatprep.mubr.msk.f32.mxu0 %vm3520_vm1, %v3519_v0 }
 0xa14   :  { %v1473_v11 = vmul.f32 %v3748_v1, %v1471_v9  ;;  %3211 = vmatprep.subr.mxu0 %v3519_v0 }
 0xa15   :  { %3212 = vmatpush3.msra.mxu0 %v3685_v19 }
 0xa16   :  { %v1474_v14 = vadd.f32 %v1473_v11, %v1468_v10  ;;  %3214 = vmatmul.mubr.msk.f32.vlgmr.msra.gmra.mxu0 %vm208_vm2, %v1649_v12  ;;  %3221 = vmatprep.subr.mxu0 %v3519_v0 }
 0xa17   :  { %3223 = vmatprep.mubr.msk.f32.mxu0 %vm3520_vm1, %v3519_v0 }
 0xa18   :  { %v1480_v17 = vadd.f32 %v1479_v13, %v1474_v14  ;;  %v1483_v20 = vpop.permute.xlu1 %1482 }
 0xa19   :  { %v1485_v22 = vmul.f32 %v3756_v7, %v1483_v20 }
 0xa1b   :  { %v1486_v29 = vadd.f32 %v1485_v22, %v1480_v17 }
 0xace   :  { %v3948_v21 = vpop.f32.mrf.mxu0 }
 0xad0   :  { %v3191_v23 = vpop.f32.mrf.mxu0 }
 0xad2   :  { %v1557_v27 = vpop.f32.mrf.mxu0 }
 0xad3   :  { %v1561_v31 = vmul.f32 0.25, %v1557_v27 }
 0xad4   :  { %v3203_v32 = vpop.f32.mrf.mxu0 }
 0xad5   :  { %v1562_v34 = vadd.f32 %v1561_v31, %v1486_v29 }
 0xad6   :  { %v1718_v35 = vpop.f32.mrf.mxu0 }
 0xad7   :  { %v1563_v42 = vsel %vm406_vm11, %v1562_v34, -inf }
 0xad8   :  { %1564 = vmax.xlane.f32.xlu1 %v1563_v42  ;;  %v3215_v43 = vpop.f32.mrf.mxu0 }
 0xae9   :  { %1770 = vrot.lane.b32.xlu1 %v3884_v53, %s3531_s29 }
 0xaed   :  { %1729 = vperm.xlu1 %3396, %v1718_v35  }
 0xaf1   :  { %3397 = vset.pattern.permute.xlu1 %v3524_v36 }
 0xaf2   :  { %1735 = vperm.xlu1 %3397, %v1718_v35  }
 0xaf6   :  { %3398 = vset.pattern.permute.xlu1 %v3526_v38 }
 0xaf7   :  { %1741 = vperm.xlu1 %3398, %v1718_v35  }
 0xafb   :  { %3399 = vset.pattern.permute.xlu1 %v3525_v37 }
 0xafc   :  { %1747 = vperm.xlu1 %3399, %v1718_v35  }
 0xb00   :  { %3400 = vset.pattern.permute.xlu1 %v3528_v40 }
 0xb01   :  { %1753 = vperm.xlu1 %3400, %v1718_v35  }
 0xb05   :  { %3401 = vset.pattern.permute.xlu1 %v3529_v41 }
 0xb06   :  { %1759 = vperm.xlu1 %3401, %v1718_v35  }
 0xb0a   :  { %3402 = vset.pattern.permute.xlu1 %v3527_v39 }
 0xb0b   :  { %1765 = vperm.xlu1 %3402, %v1718_v35  }
 0xb0f   :  { %3403 = vset.pattern.permute.xlu1 %v3522_v25 }
 0xb61   :  { %v1565_v44 = vpop.xlane.xlu1 %1564 }
 0xb62   :  { %v1566_v45 = vsub.f32 %v1562_v34, %v1565_v44 }
 0xb64   :  { %v1567_v33 = vmul.f32 1.442695, %v1566_v45 }
 0xb65   :  { %v1771_v26 = vpop.permute.xlu1 %1770 }
 0xb66   :  { %3436 = vpow2.f32 %v1567_v33 }
 0xb69   :  { %v1730_v30 = vpop.permute.xlu1 %1729 }
 0xb6a   :  { %v1732_v60 = vmul.f32 %v3729_v48, %v1730_v30 }
 0xb6d   :  { %v1736_v58 = vpop.permute.xlu1 %1735 }
 0xb6e   :  { %v1738_v2 = vmul.f32 %v3735_v51, %v1736_v58 }
 0xb73   :  { %v3437_v46 = vpop.eup %3436 }
 0xb74   :  { %v1569_v47 = vsel %vm406_vm11, %v3437_v46, 0.0 }
 0xb75   :  { %1570 = vadd.xlane.f32.xlu0 %v1569_v47 }
 0xb8b   :  { %1724 = vperm.xlu0 %3395, %v1718_v35  }
 0xb8f   :  { %1939 = vrot.lane.b32.xlu0 %v3884_v53, %s3532_s30 }
 0xb90   :  { %3405 = vset.pattern.permute.xlu0 %v3524_v36 }
 0xbfe   :  { %v1571_v50 = vpop.xlane.xlu0 %1570 }
 0xbff   :  { %3438 = vrcp.f32 %v1571_v50 }
 0xc06   :  { %v1725_v55 = vpop.permute.xlu0 %1724 }
 0xc07   :  { %v1727_v59 = vmul.f32 %v3732_v49, %v1725_v55 }
 0xc09   :  { %v1733_v62 = vadd.f32 %v1732_v60, %v1727_v59 }
 0xc0a   :  { %v3975_v57 = vpop.permute.xlu0 %1939 }
 0xc0c   :  { %v3439_v52 = vpop.eup %3438 }
 0xc0d   :  { %v1573_v28 = vmul.f32 %v3439_v52, %v3437_v46 }
 0xc0f   :  { %3207 = vmatmul.mubr.msk.f32.vlgmr.msra.gmra.mxu1 %vm406_vm11, %v1573_v28 }
 0xc10   :  { %3217 = vmatpush3.xpose.msk.msra.mxu1 %vm208_vm2, %v1771_v26  ;;  %3218 = vmatprep.mubr.msk.f32.mxu1 %vm3520_vm1, %v3519_v0 }
 0xc11   :  { %3226 = vmatprep.subr.mxu1 %v3519_v0 }
 0xc13   :  { %3219 = vmatmul.mubr.msk.f32.vlgmr.msra.gmra.mxu1 %vm208_vm2, %v1649_v12 }
 0xc14   :  { %3227 = vmatpush3.msra.mxu1 %v3678_v18  ;;  %3230 = vmatprep.mubr.msk.f32.mxu1 %vm3520_vm1, %v3519_v0  ;;  %v1742_v18 = vpop.permute.xlu1 %1741 }
 0xc15   :  { %3228 = vmatprep.subr.mxu1 %v3519_v0  ;;  %v1744_v3 = vmul.f32 %v3741_v56, %v1742_v18 }
 0xc16   :  { %3229 = vmatpush3.msra.mxu1 %v3685_v19  ;;  %v1739_v19 = vadd.f32 %v1738_v2, %v1733_v62 }
 0xc17   :  { %3231 = vmatmul.mubr.msk.f32.vlgmr.msra.gmra.mxu1 %vm208_vm2, %v3975_v57  ;;  %3238 = vmatprep.subr.mxu1 %v3519_v0 }
 0xc18   :  { %3240 = vmatprep.mubr.msk.f32.mxu1 %vm3520_vm1, %v3519_v0  ;;  %v1748_v63 = vpop.permute.xlu1 %1747  ;;  %v1745_v5 = vadd.f32 %v1744_v3, %v1739_v19 }
 0xc19   :  { %v1750_v8 = vmul.f32 %v3745_v61, %v1748_v63 }
 0xc1b   :  { %v1751_v9 = vadd.f32 %v1750_v8, %v1745_v5 }
 0xc1c   :  { %v1754_v4 = vpop.permute.xlu1 %1753 }
 0xc1d   :  { %v1756_v11 = vmul.f32 %v3748_v1, %v1754_v4 }
 0xc1f   :  { %v1757_v12 = vadd.f32 %v1756_v11, %v1751_v9 }
 0xc20   :  { %v1760_v10 = vpop.permute.xlu1 %1759 }
 0xc21   :  { %v1762_v13 = vmul.f32 %v3753_v6, %v1760_v10 }
 0xc23   :  { %v1763_v20 = vadd.f32 %v1762_v13, %v1757_v12 }
 0xc24   :  { %v1766_v14 = vpop.permute.xlu1 %1765 }
 0xc25   :  { %v1768_v23 = vmul.f32 %v3756_v7, %v1766_v14  ;;  %v3468_v14 = vld [vmem:[%s4215_s5 + $0x8] sm:$0xff] }
 0xc27   :  { %v1769_v31 = vadd.f32 %v1768_v23, %v1763_v20  ;;  %v3469_v23 = vld [vmem:[%s4215_s5] sm:$0xff]  ;;  %s3537_s5 = smov [#allocation6]  }
 0xccf   :  { %v1643_v17 = vpop.f32.mrf.mxu1 }
 0xcd0   :  { %1647 = vst.msk [vmem:[#allocation2 + $0x8] sm:$0xff] %vm208_vm2, %v1643_v17 }
 0xcd1   :  { %v3208_v22 = vpop.f32.mrf.mxu1 }
 0xcd3   :  { %v1840_v27 = vpop.f32.mrf.mxu1 }
 0xcd4   :  { %v1844_v29 = vmul.f32 0.25, %v1840_v27 }
 0xcd5   :  { %v3220_v32 = vpop.f32.mrf.mxu1 }
 0xcd6   :  { %v1845_v34 = vadd.f32 %v1844_v29, %v1769_v31 }
 0xcd7   :  { %v2009_v35 = vpop.f32.mrf.mxu1 }
 0xcd8   :  { %v1846_v42 = vsel %vm406_vm11, %v1845_v34, -inf }
 0xcd9   :  { %1847 = vmax.xlane.f32.xlu1 %v1846_v42  ;;  %v3232_v43 = vpop.f32.mrf.mxu1 }
 0xcea   :  { %1858 = vrot.lane.b32.xlu1 %v3888_v54, %s3530_s2 }
 0xcee   :  { %2015 = vperm.xlu1 %3403, %v2009_v35  }
 0xcf2   :  { %3404 = vset.pattern.permute.xlu1 %v3521_v24 }
 0xcf3   :  { %2020 = vperm.xlu1 %3404, %v2009_v35  }
 0xcf7   :  { %3406 = vset.pattern.permute.xlu1 %v3526_v38 }
 0xcf8   :  { %2032 = vperm.xlu1 %3406, %v2009_v35  }
 0xcfc   :  { %3407 = vset.pattern.permute.xlu1 %v3525_v37 }
 0xcfd   :  { %2038 = vperm.xlu1 %3407, %v2009_v35  }
 0xd01   :  { %3409 = vset.pattern.permute.xlu1 %v3529_v41 }
 0xd02   :  { %2050 = vperm.xlu1 %3409, %v2009_v35  }
 0xd06   :  { %3410 = vset.pattern.permute.xlu1 %v3527_v39 }
 0xd07   :  { %2056 = vperm.xlu1 %3410, %v2009_v35  }
 0xd0b   :  { %2229 = vrot.lane.b32.xlu1 %v3884_v53, %s3534_s20 }
 0xd0c   :  { %3412 = vset.pattern.permute.xlu1 %v3521_v24 }
 0xd62   :  { %v1848_v44 = vpop.xlane.xlu1 %1847 }
 0xd63   :  { %v1849_v45 = vsub.f32 %v1845_v34, %v1848_v44 }
 0xd65   :  { %v1850_v33 = vmul.f32 1.442695, %v1849_v45 }
 0xd66   :  { %v1859_v46 = vpop.permute.xlu1 %1858 }
 0xd67   :  { %3440 = vpow2.f32 %v1850_v33  ;;  %3222 = vmatpush3.msra.mxu0 %v1859_v46 }
 0xd68   :  { %3233 = vmatprep.subr.mxu0 %v3519_v0 }
 0xd6a   :  { %v2016_v47 = vpop.permute.xlu1 %2015 }
 0xd6b   :  { %v2018_v52 = vmul.f32 %v3732_v49, %v2016_v47 }
 0xd6e   :  { %v2021_v50 = vpop.permute.xlu1 %2020 }
 0xd6f   :  { %v2023_v28 = vmul.f32 %v3729_v48, %v2021_v50 }
 0xd71   :  { %v2024_v26 = vadd.f32 %v2023_v28, %v2018_v52 }
 0xd73   :  { %v2033_v24 = vpop.permute.xlu1 %2032 }
 0xd74   :  { %v3441_v55 = vpop.eup %3440  ;;  %v2035_v19 = vmul.f32 %v3741_v56, %v2033_v24 }
 0xd75   :  { %v1852_v30 = vsel %vm406_vm11, %v3441_v55, 0.0 }
 0xd76   :  { %1853 = vadd.xlane.f32.xlu0 %v1852_v30 }
 0xd78   :  { %v2039_v18 = vpop.permute.xlu1 %2038 }
 0xd79   :  { %v2041_v5 = vmul.f32 %v3745_v61, %v2039_v18 }
 0xd7d   :  { %v2051_v60 = vpop.permute.xlu1 %2050 }
 0xd7e   :  { %v2053_v12 = vmul.f32 %v3753_v6, %v2051_v60 }
 0xd82   :  { %v2057_v9 = vpop.permute.xlu1 %2056 }
 0xd83   :  { %v2059_v17 = vmul.f32 %v3756_v7, %v2057_v9 }
 0xd86   :  { %v2230_v22 = vpop.permute.xlu1 %2229 }
 0xd8c   :  { %2061 = vrot.lane.b32.xlu0 %v3884_v53, %s3533_s15 }
 0xd90   :  { %2026 = vperm.xlu0 %3405, %v2009_v35  }
 0xd94   :  { %3408 = vset.pattern.permute.xlu0 %v3528_v40 }
 0xd95   :  { %2044 = vperm.xlu0 %3408, %v2009_v35  }
 0xd99   :  { %3411 = vset.pattern.permute.xlu0 %v3522_v25 }
 0xdff   :  { %v1854_v58 = vpop.xlane.xlu0 %1853 }
 0xe00   :  { %3442 = vrcp.f32 %v1854_v58 }
 0xe03   :  { %v2062_v59 = vpop.permute.xlu0 %2061 }
 0xe0b   :  { %v2027_v62 = vpop.permute.xlu0 %2026 }
 0xe0c   :  { %v2029_v63 = vmul.f32 %v3735_v51, %v2027_v62 }
 0xe0d   :  { %v3443_v2 = vpop.eup %3442 }
 0xe0e   :  { %v2030_v3 = vadd.f32 %v2029_v63, %v2024_v26  ;;  %v1856_v4 = vmul.f32 %v3443_v2, %v3441_v55 }
 0xe10   :  { %v2036_v8 = vadd.f32 %v2035_v19, %v2030_v3  ;;  %3224 = vmatmul.mubr.msk.f32.vlgmr.msra.gmra.mxu0 %vm406_vm11, %v1856_v4  ;;  %v2045_v25 = vpop.permute.xlu0 %2044 }
 0xe11   :  { %3234 = vmatpush3.xpose.msk.msra.mxu0 %vm208_vm2, %v2062_v59  ;;  %v2047_v10 = vmul.f32 %v3748_v1, %v2045_v25  ;;  %3235 = vmatprep.mubr.msk.f32.mxu0 %vm3520_vm1, %v3519_v0 }
 0xe12   :  { %v2042_v11 = vadd.f32 %v2041_v5, %v2036_v8  ;;  %3243 = vmatprep.subr.mxu0 %v3519_v0 }
 0xe14   :  { %v2048_v13 = vadd.f32 %v2047_v10, %v2042_v11  ;;  %3236 = vmatmul.mubr.msk.f32.vlgmr.msra.gmra.mxu0 %vm208_vm2, %v3975_v57 }
 0xe15   :  { %3244 = vmatpush3.msra.mxu0 %v3468_v14  ;;  %3247 = vmatprep.mubr.msk.f32.mxu0 %vm3520_vm1, %v3519_v0 }
 0xe16   :  { %v2054_v20 = vadd.f32 %v2053_v12, %v2048_v13  ;;  %3245 = vmatprep.subr.mxu0 %v3519_v0 }
 0xe17   :  { %3246 = vmatpush3.msra.mxu0 %v3469_v23 }
 0xe18   :  { %3248 = vmatmul.mubr.msk.f32.vlgmr.msra.gmra.mxu0 %vm208_vm2, %v2230_v22  ;;  %v2060_v57 = vadd.f32 %v2059_v17, %v2054_v20  ;;  %3255 = vmatprep.subr.mxu0 %v3519_v0 }
 0xe19   :  { %3257 = vmatprep.mubr.msk.f32.mxu0 %vm3520_vm1, %v3519_v0 }
 0xed0   :  { %v4037_v27 = vpop.f32.mrf.mxu0 }
 0xed2   :  { %v3225_v29 = vpop.f32.mrf.mxu0 }
 0xed3   :  { %v2527_v29 = vld [vmem:[%s4213_s3 + $0x30] sm:$0xff] }
 0xed4   :  { %v2131_v31 = vpop.f32.mrf.mxu0 }
 0xed5   :  { %v2135_v32 = vmul.f32 0.25, %v2131_v31  ;;  %v2526_v31 = vld [vmem:[%s4213_s3 + $0x28] sm:$0xff] }
 0xed6   :  { %v3237_v34 = vpop.f32.mrf.mxu0 }
 0xed7   :  { %v2136_v35 = vadd.f32 %v2135_v32, %v2060_v57  ;;  %v2525_v32 = vld [vmem:[%s4213_s3 + $0x20] sm:$0xff]  ;;  %v2524_v34 = vld [vmem:[%s4213_s3 + $0x18] sm:$0xff] }
 0xed8   :  { %v2299_v42 = vpop.f32.mrf.mxu0 }
 0xed9   :  { %v2137_v43 = vsel %vm406_vm11, %v2136_v35, -inf }
 0xeda   :  { %2138 = vmax.xlane.f32.xlu0 %v2137_v43  ;;  %v3249_v44 = vpop.f32.mrf.mxu0  ;;  %v2521_v43 = vld [vmem:[%s4213_s3] sm:$0xff] }
 0xef0   :  { %2148 = vrot.lane.b32.xlu0 %v3888_v54, %s3532_s30 }
 0xef4   :  { %2305 = vperm.xlu0 %3411, %v2299_v42  }
 0xef8   :  { %3413 = vset.pattern.permute.xlu0 %v3524_v36 }
 0xef9   :  { %2316 = vperm.xlu0 %3413, %v2299_v42  }
 0xefd   :  { %3416 = vset.pattern.permute.xlu0 %v3528_v40 }
 0xefe   :  { %2334 = vperm.xlu0 %3416, %v2299_v42  }
 0xf02   :  { %3419 = vset.pattern.permute.xlu0 %v3527_v39 }
 0xf63   :  { %v2139_v45 = vpop.xlane.xlu0 %2138 }
 0xf64   :  { %v2140_v33 = vsub.f32 %v2136_v35, %v2139_v45  ;;  %v2523_v35 = vld [vmem:[%s4213_s3 + $0x10] sm:$0xff] }
 0xf66   :  { %v2141_v46 = vmul.f32 1.442695, %v2140_v33 }
 0xf67   :  { %v2149_v47 = vpop.permute.xlu0 %2148 }
 0xf68   :  { %3444 = vpow2.f32 %v2141_v46  ;;  %3239 = vmatpush3.msra.mxu1 %v2149_v47  ;;  %v3019_v47 = vld [vmem:[%s4214_s4] ss:$0 sm:$0xff] }
 0xf69   :  { %3250 = vmatprep.subr.mxu1 %v3519_v0 }
 0xf75   :  { %v3445_v50 = vpop.eup %3444 }
 0xf76   :  { %v2143_v52 = vsel %vm406_vm11, %v3445_v50, 0.0 }
 0xf77   :  { %2144 = vadd.xlane.f32.xlu1 %v2143_v52 }
 0xf88   :  { %2351 = vrot.lane.b32.xlu1 %v3884_v53, %s3535_s21 }
 0xf8c   :  { %2310 = vperm.xlu1 %3412, %v2299_v42  }
 0xf90   :  { %3414 = vset.pattern.permute.xlu1 %v3526_v38  ;;  %v2306_v38 = vpop.permute.xlu0 %2305 }
 0xf91   :  { %2322 = vperm.xlu1 %3414, %v2299_v42   ;;  %v2308_v53 = vmul.f32 %v3732_v49, %v2306_v38 }
 0xf94   :  { %v2317_v55 = vpop.permute.xlu0 %2316 }
 0xf95   :  { %3415 = vset.pattern.permute.xlu1 %v3525_v37  ;;  %v2319_v58 = vmul.f32 %v3735_v51, %v2317_v55 }
 0xf96   :  { %2328 = vperm.xlu1 %3415, %v2299_v42  }
 0xf98   :  { %v2335_v63 = vpop.permute.xlu0 %2334 }
 0xf99   :  { %v2337_v19 = vmul.f32 %v3748_v1, %v2335_v63  ;;  %v2671_v63 = vld [vmem:[#allocation3 + $0x38] sm:$0xff] }
 0xf9a   :  { %3417 = vset.pattern.permute.xlu1 %v3529_v41 }
 0xf9b   :  { %2340 = vperm.xlu1 %3417, %v2299_v42  }
 0xf9f   :  { %3418 = vset.pattern.permute.xlu1 %v3527_v39 }
 0xfa0   :  { %2346 = vperm.xlu1 %3418, %v2299_v42   ;;  %v2522_v42 = vld [vmem:[%s4213_s3 + $0x8] sm:$0xff] }
0x1000   :  { %v2145_v36 = vpop.xlane.xlu1 %2144 }
0x1001   :  { %3446 = vrcp.f32 %v2145_v36 }
0x1004   :  { %v2352_v26 = vpop.permute.xlu1 %2351 }
0x1008   :  { %v2311_v37 = vpop.permute.xlu1 %2310 }
0x1009   :  { %v2313_v39 = vmul.f32 %v3729_v48, %v2311_v37  ;;  %v3471_v37 = vld [vmem:[%s4210_s0] sm:$0xff] }
0x100b   :  { %v2314_v30 = vadd.f32 %v2313_v39, %v2308_v53 }
0x100c   :  { %v2323_v41 = vpop.permute.xlu1 %2322 }
0x100d   :  { %v2320_v18 = vadd.f32 %v2319_v58, %v2314_v30  ;;  %v2325_v59 = vmul.f32 %v3741_v56, %v2323_v41 }
0x100e   :  { %v3447_v40 = vpop.eup %3446 }
0x100f   :  { %v2147_v28 = vmul.f32 %v3447_v40, %v3445_v50  ;;  %v2326_v62 = vadd.f32 %v2325_v59, %v2320_v18 }
0x1011   :  { %3241 = vmatmul.mubr.msk.f32.vlgmr.msra.gmra.mxu1 %vm406_vm11, %v2147_v28  ;;  %v2329_v24 = vpop.permute.xlu1 %2328  ;;  %v3470_v28 = vld [vmem:[%s4210_s0 + $0x8] sm:$0xff] }
0x1012   :  { %3251 = vmatpush3.xpose.msk.msra.mxu1 %vm208_vm2, %v2352_v26  ;;  %3252 = vmatprep.mubr.msk.f32.mxu1 %vm3520_vm1, %v3519_v0  ;;  %v2331_v60 = vmul.f32 %v3745_v61, %v2329_v24 }
0x1014   :  { %v2332_v2 = vadd.f32 %v2331_v60, %v2326_v62 }
0x1015   :  { %3253 = vmatmul.mubr.msk.f32.vlgmr.msra.gmra.mxu1 %vm208_vm2, %v2230_v22 }
0x1016   :  { %v2341_v0 = vpop.permute.xlu1 %2340  ;;  %v2338_v48 = vadd.f32 %v2337_v19, %v2332_v2  ;;  %v2670_v2 = vld [vmem:[#allocation3 + $0x30] sm:$0xff]  ;;  %v2669_v19 = vld [vmem:[#allocation3 + $0x28] sm:$0xff] }
0x1017   :  { %v2343_v49 = vmul.f32 %v3753_v6, %v2341_v0 }
0x1019   :  { %v2344_v51 = vadd.f32 %v2343_v49, %v2338_v48  ;;  %v2667_v48 = vld [vmem:[#allocation3 + $0x18] sm:$0xff]  ;;  %v2666_v49 = vld [vmem:[#allocation3 + $0x10] sm:$0xff] }
0x101b   :  { %v2347_v3 = vpop.permute.xlu1 %2346 }
0x101c   :  { %v2349_v5 = vmul.f32 %v3756_v7, %v2347_v3  ;;  %v2668_v3 = vld [vmem:[#allocation3 + $0x20] sm:$0xff] }
0x101e   :  { %v2350_v9 = vadd.f32 %v2349_v5, %v2344_v51  ;;  %v2664_v5 = vld [vmem:[#allocation3] sm:$0xff] }
0x10d1   :  { %v2220_v4 = vpop.f32.mrf.mxu1 }
0x10d3   :  { %v3242_v8 = vpop.f32.mrf.mxu1 }
0x10d5   :  { %v2421_v25 = vpop.f32.mrf.mxu1 }
0x10d6   :  { %v2425_v56 = vmul.f32 0.25, %v2421_v25 }
0x10d7   :  { %v3254_v10 = vpop.f32.mrf.mxu1 }
0x10d8   :  { %v2426_v61 = vadd.f32 %v2425_v56, %v2350_v9 }
0x10da   :  { %v2427_v11 = vsel %vm406_vm11, %v2426_v61, -inf }
0x10db   :  { %2428 = vmax.xlane.f32.xlu0 %v2427_v11  ;;  %v3022_v11 = vld [vmem:[%s4216_s6] ss:$0 sm:$0xff] }
0x10f1   :  { %2438 = vrot.lane.b32.xlu0 %v3888_v54, %s3534_s20 }
0x10f5   :  { %1070 = vrot.lane.b32.xlu0 %v3905_v16, %s3533_s15 }
0x10f9   :  { %1361 = vrot.lane.b32.xlu0 %v3948_v21, %s3531_s29 }
0x1164   :  { %v2429_v1 = vpop.xlane.xlu0 %2428 }
0x1165   :  { %v2430_v6 = vsub.f32 %v2426_v61, %v2429_v1 }
0x1167   :  { %v2431_v7 = vmul.f32 1.442695, %v2430_v6 }
0x1168   :  { %v2439_v12 = vpop.permute.xlu0 %2438 }
0x1169   :  { %3448 = vpow2.f32 %v2431_v7  ;;  %3256 = vmatpush3.msra.mxu0 %v2439_v12 }
0x116c   :  { %v1071_v54 = vpop.permute.xlu0 %1070 }
0x1170   :  { %v1362_v17 = vpop.permute.xlu0 %1361 }
0x1176   :  { %v3449_v13 = vpop.eup %3448 }
0x1177   :  { %v2433_v14 = vsel %vm406_vm11, %v3449_v13, 0.0 }
0x1178   :  { %2434 = vadd.xlane.f32.xlu1 %v2433_v14 }
0x1189   :  { %779 = vrot.lane.b32.xlu1 %v3855_v15, %s3535_s21 }
0x118d   :  { %1935 = vrot.lane.b32.xlu1 %v4037_v27, %s3535_s21  ;;  %v2528_v27 = vld [vmem:[%s4213_s3 + $0x38] sm:$0xff]  ;;  %s2965_s3 = sshll.u32 %s3537_s5, 4  ;;  %s2966_s3 = int_to_ptr.vmem [resolvable:$true] %s2965_s3 }
0x118e   :  { %3260 = vmatprep.subr.mxu0 %v2528_v27  ;;  %s3492_s1 = scalar_lea.vmem %s2966_s3, 256  ;;  %p3497_p6 = scmp.lt.s32.totalorder %s2966_s3, %s2966_s3 }
0x118f   :  { %p3493_p5 = scmp.ne.s32.totalorder %s2966_s3, %s3492_s1  ;;  %p3498_p7 = scmp.lt.s32.totalorder %s3492_s1, %s3492_s1 }
0x1191   :  { %2225 = vrot.lane.b32.xlu1 %v2220_v4, %s3533_s15  ;;  %v2665_v4 = vld [vmem:[#allocation3 + $0x8] sm:$0xff]  ;;  %p3499_p8 = por %p3498_p7, %p3497_p6 }
0x1193   :  { %p3500_p9 = pnand %p3499_p8, %p3493_p5 }
0x1201   :  { %v2435_v16 = vpop.xlane.xlu1 %2434 }
0x1202   :  { %3450 = vrcp.f32 %v2435_v16 }
0x1205   :  { %v780_v21 = vpop.permute.xlu1 %779 }
0x1206   :  { %783 = vst.msk [vmem:[#allocation2] sm:$0xff] %vm782_vm12, %v780_v21  ;;  %v2829_v21 = vld [vmem:[%s4220_s10 + $0x78] sm:$0xff] }
0x1207   :  { %1074 = vst.msk [vmem:[#allocation2] sm:$0xff] %vm1073_vm13, %v1071_v54  ;;  %3298 = vmatprep.subr.mxu1 %v2829_v21 }
0x1208   :  { %1365 = vst.msk [vmem:[#allocation2] sm:$0xff] %vm1364_vm14, %v1362_v17  ;;  %3299 = vmatpush3.msra.mxu1 %v2829_v21  ;;  %v2828_v17 = vld [vmem:[%s4220_s10 + $0x70] sm:$0xff] }
0x1209   :  { %v1936_v20 = vpop.permute.xlu1 %1935  ;;  %3300 = vmatprep.subr.mxu1 %v2828_v17 }
0x120a   :  { %1938 = vst.msk [vmem:[#allocation2 + $0x8] sm:$0xff] %vm782_vm12, %v1936_v20  ;;  %3301 = vmatpush3.msra.mxu1 %v2828_v17  ;;  %v2827_v20 = vld [vmem:[%s4220_s10 + $0x68] sm:$0xff] }
0x120b   :  { %3302 = vmatprep.subr.mxu1 %v2827_v20 }
0x120c   :  { %3303 = vmatpush3.msra.mxu1 %v2827_v20 }
0x120d   :  { %v2226_v15 = vpop.permute.xlu1 %2225 }
0x120e   :  { %2228 = vst.msk [vmem:[#allocation2 + $0x8] sm:$0xff] %vm1073_vm13, %v2226_v15  ;;  %v2826_v15 = vld [vmem:[%s4220_s10 + $0x60] sm:$0xff] }
0x120f   :  { %v3451_v22 = vpop.eup %3450  ;;  %v2519_v57 = vld [vmem:[#allocation2] sm:$0xff]  ;;  %3304 = vmatprep.subr.mxu1 %v2826_v15 }
0x1210   :  { %v2437_v23 = vmul.f32 %v3451_v22, %v3449_v13  ;;  %v3023_v13 = vld [vmem:[%s4217_s7] ss:$0 sm:$0xff]  ;;  %3305 = vmatpush3.msra.mxu1 %v2826_v15  ;;  %v2825_v22 = vld [vmem:[%s4220_s10 + $0x58] sm:$0xff] }
0x1211   :  { %3306 = vmatprep.subr.mxu1 %v2825_v22 }
0x1212   :  { %3258 = vmatmul.mubr.msk.f32.vlgmr.msra.gmra.mxu0 %vm406_vm11, %v2437_v23  ;;  %3307 = vmatpush3.msra.mxu1 %v2825_v22  ;;  %v2824_v23 = vld [vmem:[%s4220_s10 + $0x50] sm:$0xff] }
0x1213   :  { %3276 = vmatprep.mubr.msk.f32.mxu0 %vm92_vm0, %v2519_v57  ;;  %3261 = vmatpush3.msra.mxu0 %v2528_v27  ;;  %v2823_v57 = vld [vmem:[%s4220_s10 + $0x48] sm:$0xff]  ;;  %v2822_v27 = vld [vmem:[%s4220_s10 + $0x40] sm:$0xff] }
0x1214   :  { %3262 = vmatprep.subr.mxu0 %v2527_v29  ;;  %3308 = vmatprep.subr.mxu1 %v2824_v23 }
0x1215   :  { %3263 = vmatpush3.msra.mxu0 %v2527_v29  ;;  %3309 = vmatpush3.msra.mxu1 %v2824_v23  ;;  %v2821_v29 = vld [vmem:[%s4220_s10 + $0x38] sm:$0xff] }
0x1216   :  { %3264 = vmatprep.subr.mxu0 %v2526_v31  ;;  %3310 = vmatprep.subr.mxu1 %v2823_v57 }
0x1217   :  { %3265 = vmatpush3.msra.mxu0 %v2526_v31  ;;  %3311 = vmatpush3.msra.mxu1 %v2823_v57  ;;  %v2820_v31 = vld [vmem:[%s4220_s10 + $0x30] sm:$0xff] }
0x1218   :  { %3266 = vmatprep.subr.mxu0 %v2525_v32  ;;  %3312 = vmatprep.subr.mxu1 %v2822_v27 }
0x1219   :  { %3267 = vmatpush3.msra.mxu0 %v2525_v32  ;;  %3313 = vmatpush3.msra.mxu1 %v2822_v27  ;;  %v2819_v32 = vld [vmem:[%s4220_s10 + $0x28] sm:$0xff] }
0x121a   :  { %3268 = vmatprep.subr.mxu0 %v2524_v34  ;;  %3314 = vmatprep.subr.mxu1 %v2821_v29 }
0x121b   :  { %3269 = vmatpush3.msra.mxu0 %v2524_v34  ;;  %3315 = vmatpush3.msra.mxu1 %v2821_v29  ;;  %v2818_v34 = vld [vmem:[%s4220_s10 + $0x20] sm:$0xff] }
0x121c   :  { %3270 = vmatprep.subr.mxu0 %v2523_v35  ;;  %3316 = vmatprep.subr.mxu1 %v2820_v31 }
0x121d   :  { %3271 = vmatpush3.msra.mxu0 %v2523_v35  ;;  %3317 = vmatpush3.msra.mxu1 %v2820_v31  ;;  %v2817_v35 = vld [vmem:[%s4220_s10 + $0x18] sm:$0xff] }
0x121e   :  { %3272 = vmatprep.subr.mxu0 %v2522_v42  ;;  %3318 = vmatprep.subr.mxu1 %v2819_v32 }
0x121f   :  { %3273 = vmatpush3.msra.mxu0 %v2522_v42  ;;  %3319 = vmatpush3.msra.mxu1 %v2819_v32  ;;  %v2816_v42 = vld [vmem:[%s4220_s10 + $0x10] sm:$0xff]  ;;  %v3027_v32 = vld [vmem:[%s4221_s11] ss:$0 sm:$0xff] }
0x1220   :  { %3274 = vmatprep.subr.mxu0 %v2521_v43  ;;  %3320 = vmatprep.subr.mxu1 %v2818_v34 }
0x1221   :  { %3275 = vmatpush3.msra.mxu0 %v2521_v43  ;;  %3321 = vmatpush3.msra.mxu1 %v2818_v34  ;;  %v2815_v43 = vld [vmem:[%s4220_s10 + $0x8] sm:$0xff] }
0x1222   :  { %3279 = vmatprep.subr.mxu0 %v2671_v63  ;;  %3322 = vmatprep.subr.mxu1 %v2817_v35 }
0x1223   :  { %3323 = vmatpush3.msra.mxu1 %v2817_v35 }
0x1224   :  { %3324 = vmatprep.subr.mxu1 %v2816_v42 }
0x1225   :  { %3325 = vmatpush3.msra.mxu1 %v2816_v42 }
0x1226   :  { %3326 = vmatprep.subr.mxu1 %v2815_v43 }
0x1227   :  { %3327 = vmatpush3.msra.mxu1 %v2815_v43 }
0x12d2   :  { %v2510_v44 = vpop.f32.mrf.mxu0 }
0x12d3   :  { %2515 = vrot.lane.b32.xlu0 %v2510_v44, %s3531_s29  ;;  %v2814_v44 = vld [vmem:[%s4220_s10] sm:$0xff] }
0x12d4   :  { %v3259_v45 = vpop.f32.mrf.mxu0  ;;  %3328 = vmatprep.subr.mxu1 %v2814_v44 }
0x12d5   :  { %3329 = vmatpush3.msra.mxu1 %v2814_v44  ;;  %v3024_v45 = vld [vmem:[%s4219_s9] ss:$0 sm:$0xff] }
0x1345   :  { %v2516_v33 = vpop.permute.xlu0 %2515 }
0x1346   :  { %2518 = vst.msk [vmem:[#allocation2 + $0x8] sm:$0xff] %vm1364_vm14, %v2516_v33 }
0x134d   :  { %v2520_v46 = vld [vmem:[#allocation2 + $0x8] sm:$0xff] }
0x134e   :  { %3277 = vmatmul.mubr.msk.f32.vlgmr.msra.gmra.mxu0 %vm92_vm0, %v2520_v46 }
0x134f   :  { %3280 = vmatpush3.msra.mxu0 %v2671_v63 }
0x1350   :  { %3281 = vmatprep.subr.mxu0 %v2670_v2 }
0x1351   :  { %3282 = vmatpush3.msra.mxu0 %v2670_v2 }
0x1352   :  { %3283 = vmatprep.subr.mxu0 %v2669_v19 }
0x1353   :  { %3284 = vmatpush3.msra.mxu0 %v2669_v19 }
0x1354   :  { %3285 = vmatprep.subr.mxu0 %v2668_v3 }
0x1355   :  { %3286 = vmatpush3.msra.mxu0 %v2668_v3 }
0x1356   :  { %3287 = vmatprep.subr.mxu0 %v2667_v48 }
0x1357   :  { %3288 = vmatpush3.msra.mxu0 %v2667_v48 }
0x1358   :  { %3289 = vmatprep.subr.mxu0 %v2666_v49 }
0x1359   :  { %3290 = vmatpush3.msra.mxu0 %v2666_v49 }
0x135a   :  { %3291 = vmatprep.subr.mxu0 %v2665_v4 }
0x135b   :  { %3292 = vmatpush3.msra.mxu0 %v2665_v4 }
0x135c   :  { %3293 = vmatprep.subr.mxu0 %v2664_v5 }
0x135d   :  { %3294 = vmatpush3.msra.mxu0 %v2664_v5 }
0x140e   :  { %v3278_v50 = vpop.f32.mrf.mxu0 }
0x140f   :  { %v2614_v52 = vadd.f32 %v3278_v50, %v3019_v47 }
0x1410   :  { %v2608_v36 = vpop.f32.mrf.mxu0 }
0x1411   :  { %v2609_v40 = vadd.f32 %v3019_v47, %v2608_v36  ;;  %v2618_v26 = vadd.f32 %v3470_v28, %v2614_v52 }
0x1413   :  { %v2617_v38 = vadd.f32 %v3471_v37, %v2609_v40  ;;  %v2624_v41 = vsel %vm92_vm0, %v2618_v26, 0.0 }
0x1414   :  { %2625 = vadd.xlane.f32.xlu0 %v2624_v41 }
0x1415   :  { %v2621_v39 = vsel %vm92_vm0, %v2617_v38, 0.0 }
0x1416   :  { %2622 = vadd.xlane.f32.xlu1 %v2621_v39 }
0x149d   :  { %v2626_v53 = vpop.xlane.xlu0 %2625 }
0x149e   :  { %v2629_v55 = vmul.f32 0.015625, %v2626_v53 }
0x149f   :  { %v2623_v30 = vpop.xlane.xlu1 %2622 }
0x14a0   :  { %v2631_v24 = vsub.f32 %v2618_v26, %v2629_v55  ;;  %v2628_v58 = vmul.f32 0.015625, %v2623_v30 }
0x14a2   :  { %v2630_v18 = vsub.f32 %v2617_v38, %v2628_v58  ;;  %v2633_v59 = vmul.f32 %v2631_v24, %v2631_v24 }
0x14a4   :  { %v2637_v60 = vsel %vm92_vm0, %v2633_v59, 0.0  ;;  %v2632_v0 = vmul.f32 %v2630_v18, %v2630_v18 }
0x14a5   :  { %2638 = vadd.xlane.f32.xlu1 %v2637_v60 }
0x14a6   :  { %v2634_v62 = vsel %vm92_vm0, %v2632_v0, 0.0 }
0x14a7   :  { %2635 = vadd.xlane.f32.xlu0 %v2634_v62 }
0x152e   :  { %v2639_v8 = vpop.xlane.xlu1 %2638 }
0x152f   :  { %v2641_v51 = vmul.f32 0.015625, %v2639_v8 }
0x1530   :  { %v2636_v25 = vpop.xlane.xlu0 %2635 }
0x1531   :  { %v2643_v9 = vadd.f32 1e-05, %v2641_v51  ;;  %v2640_v56 = vmul.f32 0.015625, %v2636_v25 }
0x1533   :  { %3452 = vrsqrt.f32 %v2643_v9  ;;  %v2642_v10 = vadd.f32 1e-05, %v2640_v56 }
0x1535   :  { %3454 = vrsqrt.f32 %v2642_v10 }
0x1540   :  { %v3453_v61 = vpop.eup %3452 }
0x1541   :  { %v2647_v1 = vmul.f32 %v3453_v61, %v2631_v24 }
0x1542   :  { %v3455_v6 = vpop.eup %3454 }
0x1543   :  { %v2646_v7 = vmul.f32 %v3455_v6, %v2630_v18  ;;  %v2655_v12 = vmul.f32 %v3022_v11, %v2647_v1 }
0x1545   :  { %v2654_v14 = vmul.f32 %v3022_v11, %v2646_v7  ;;  %v4130_v16 = vadd.f32 %v3023_v13, %v2655_v12  ;;  %v3536_v12 = vmov 1.0  }
0x1547   :  { %v4128_v54 = vadd.f32 %v3023_v13, %v2654_v14 }
0x1549   :  { %3295 = vmatprep.mubr.msk.f32.mxu0 %vm92_vm0, %v4128_v54 }
0x154a   :  { %3296 = vmatmul.mubr.msk.f32.vlgmr.msra.gmra.mxu0 %vm92_vm0, %v4130_v16 }
0x160a   :  { %v3297_v33 = vpop.f32.mrf.mxu0 }
0x160b   :  { %v2757_v46 = vadd.f32 %v3297_v33, %v3024_v45 }
0x160c   :  { %v2751_v47 = vpop.f32.mrf.mxu0 }
0x160d   :  { %v2763_v50 = vmul.f32 0.70710677, %v2757_v46  ;;  %v2752_v52 = vadd.f32 %v3024_v45, %v2751_v47  ;;  %v2761_v27 = vmul.f32 0.5, %v2757_v46 }
0x160f   :  { %v2769_v36 = vand.u32 2147483647, %v2763_v50  ;;  %v2762_v40 = vmul.f32 0.70710677, %v2752_v52  ;;  %vm2765_vm15 = vcmp.lt.f32.partialorder %v2763_v50, 0.0  ;;  %v2760_v23 = vmul.f32 0.5, %v2752_v52 }
0x1610   :  { %v2767_v13 = vsel %vm2765_vm15, -1.0, %v3536_v12 }
0x1611   :  { %v2771_v28 = vmul.f32 0.3275911, %v2769_v36  ;;  %v2768_v26 = vand.u32 2147483647, %v2762_v40  ;;  %v2797_v39 = vsub.f32 0.0, %v2769_v36  ;;  %vm2764_vm1 = vcmp.lt.f32.partialorder %v2762_v40, 0.0 }
0x1612   :  { %v2766_v20 = vsel %vm2764_vm1, -1.0, %v3536_v12 }
0x1613   :  { %v2773_v37 = vadd.f32 1.0, %v2771_v28  ;;  %v2770_v38 = vmul.f32 0.3275911, %v2768_v26  ;;  %v2796_v53 = vsub.f32 0.0, %v2768_v26  ;;  %v2799_v55 = vmul.f32 %v2797_v39, %v2769_v36 }
0x1615   :  { %3456 = vrcp.f32 %v2773_v37  ;;  %v2772_v41 = vadd.f32 1.0, %v2770_v38  ;;  %v2798_v24 = vmul.f32 %v2796_v53, %v2768_v26  ;;  %v2802_v18 = vmul.f32 1.442695, %v2799_v55 }
0x1617   :  { %3458 = vrcp.f32 %v2772_v41  ;;  %v2800_v0 = vmul.f32 1.442695, %v2798_v24 }
0x1618   :  { %3460 = vpow2.f32 %v2802_v18 }
0x1619   :  { %3462 = vpow2.f32 %v2800_v0 }
0x1622   :  { %v3457_v30 = vpop.eup %3456 }
0x1623   :  { %v2779_v58 = vmul.f32 1.0614054, %v3457_v30 }
0x1624   :  { %v3459_v59 = vpop.eup %3458 }
0x1625   :  { %v2781_v60 = vadd.f32 -1.4531521, %v2779_v58  ;;  %v2778_v62 = vmul.f32 1.0614054, %v3459_v59  ;;  %v3461_v10 = vpop.eup %3460  ;;  %v3028_v58 = vld [vmem:[%s4222_s12] ss:$0 sm:$0xff] }
0x1626   :  { %v3463_v6 = vpop.eup %3462 }
0x1627   :  { %v2783_v63 = vmul.f32 %v3457_v30, %v2781_v60  ;;  %v2780_v2 = vadd.f32 -1.4531521, %v2778_v62  ;;  %v3029_v60 = vld [vmem:[%s4223_s13] ss:$0 sm:$0xff] }
0x1629   :  { %v2785_v19 = vadd.f32 1.4214138, %v2783_v63  ;;  %v2782_v3 = vmul.f32 %v3459_v59, %v2780_v2 }
0x162b   :  { %v2787_v48 = vmul.f32 %v3457_v30, %v2785_v19  ;;  %v2784_v49 = vadd.f32 1.4214138, %v2782_v3 }
0x162d   :  { %v2789_v4 = vadd.f32 -0.28449672, %v2787_v48  ;;  %v2786_v5 = vmul.f32 %v3459_v59, %v2784_v49 }
0x162f   :  { %v2791_v8 = vmul.f32 %v3457_v30, %v2789_v4  ;;  %v2788_v51 = vadd.f32 -0.28449672, %v2786_v5 }
0x1631   :  { %v2793_v25 = vadd.f32 0.2548296, %v2791_v8  ;;  %v2790_v9 = vmul.f32 %v3459_v59, %v2788_v51 }
0x1633   :  { %v2795_v56 = vmul.f32 %v3457_v30, %v2793_v25  ;;  %v2792_v61 = vadd.f32 0.2548296, %v2790_v9 }
0x1635   :  { %v2805_v11 = vmul.f32 %v3461_v10, %v2795_v56  ;;  %v2794_v1 = vmul.f32 %v3459_v59, %v2792_v61 }
0x1637   :  { %v2807_v7 = vsub.f32 1.0, %v2805_v11  ;;  %v2804_v14 = vmul.f32 %v3463_v6, %v2794_v1 }
0x1639   :  { %v2809_v21 = vmul.f32 %v2807_v7, %v2767_v13  ;;  %v2806_v17 = vsub.f32 1.0, %v2804_v14 }
0x163b   :  { %v2808_v15 = vmul.f32 %v2806_v17, %v2766_v20  ;;  %v2811_v22 = vadd.f32 1.0, %v2809_v21 }
0x163d   :  { %v2810_v57 = vadd.f32 1.0, %v2808_v15  ;;  %v2813_v31 = vmul.f32 %v2811_v22, %v2761_v27 }
0x163f   :  { %v2812_v29 = vmul.f32 %v2810_v57, %v2760_v23 }
0x1641   :  { %3330 = vmatprep.mubr.f32.mxu1 %v2812_v29 }
0x1642   :  { %3331 = vmatmul.mubr.f32.vlgmr.msra.gmra.mxu1 %v2813_v31 }
0x1702   :  { %v3332_v34 = vpop.f32.mrf.mxu1 }
0x1703   :  { %v2909_v35 = vadd.f32 %v3332_v34, %v3027_v32 }
0x1704   :  { %v2903_v42 = vpop.f32.mrf.mxu1 }
0x1705   :  { %v2913_v43 = vadd.f32 %v2909_v35, %v4130_v16  ;;  %v2904_v44 = vadd.f32 %v3027_v32, %v2903_v42 }
0x1707   :  { %v2919_v45 = vsel %vm92_vm0, %v2913_v43, 0.0  ;;  %v2912_v33 = vadd.f32 %v2904_v44, %v4128_v54 }
0x1708   :  { %2920 = vadd.xlane.f32.xlu1 %v2919_v45 }
0x1709   :  { %v2916_v46 = vsel %vm92_vm0, %v2912_v33, 0.0 }
0x170a   :  { %2917 = vadd.xlane.f32.xlu0 %v2916_v46 }
0x1791   :  { %v2921_v47 = vpop.xlane.xlu1 %2920 }
0x1792   :  { %v2923_v50 = vmul.f32 0.015625, %v2921_v47 }
0x1793   :  { %v2918_v52 = vpop.xlane.xlu0 %2917 }
0x1794   :  { %v2925_v36 = vsub.f32 %v2913_v43, %v2923_v50  ;;  %v2922_v40 = vmul.f32 0.015625, %v2918_v52 }
0x1796   :  { %v2924_v28 = vsub.f32 %v2912_v33, %v2922_v40  ;;  %v2927_v26 = vmul.f32 %v2925_v36, %v2925_v36 }
0x1798   :  { %v2931_v37 = vsel %vm92_vm0, %v2927_v26, 0.0  ;;  %v2926_v38 = vmul.f32 %v2924_v28, %v2924_v28 }
0x1799   :  { %2932 = vadd.xlane.f32.xlu1 %v2931_v37 }
0x179a   :  { %v2928_v16 = vsel %vm92_vm0, %v2926_v38, 0.0 }
0x179b   :  { %2929 = vadd.xlane.f32.xlu0 %v2928_v16 }
0x1822   :  { %v2933_v41 = vpop.xlane.xlu1 %2932 }
0x1823   :  { %v2935_v54 = vmul.f32 0.015625, %v2933_v41 }
0x1824   :  { %v2930_v39 = vpop.xlane.xlu0 %2929 }
0x1825   :  { %v2937_v53 = vadd.f32 1e-05, %v2935_v54  ;;  %v2934_v55 = vmul.f32 0.015625, %v2930_v39 }
0x1827   :  { %3464 = vrsqrt.f32 %v2937_v53  ;;  %v2936_v30 = vadd.f32 1e-05, %v2934_v55 }
0x1829   :  { %3466 = vrsqrt.f32 %v2936_v30 }
0x1834   :  { %v3465_v24 = vpop.eup %3464 }
0x1835   :  { %v2941_v18 = vmul.f32 %v3465_v24, %v2925_v36 }
0x1836   :  { %v3467_v59 = vpop.eup %3466 }
0x1837   :  { %v2940_v0 = vmul.f32 %v3467_v59, %v2924_v28  ;;  %v2949_v62 = vmul.f32 %v3028_v58, %v2941_v18 }
0x1839   :  { %v2948_v63 = vmul.f32 %v3028_v58, %v2940_v0  ;;  %v2957_v2 = vadd.f32 %v3029_v60, %v2949_v62 }
0x183b   :  { %v2956_v19 = vadd.f32 %v3029_v60, %v2948_v63  ;;  %2959 = vst.msk [vmem:[#allocation6 + $0x8] sm:$0xff] %vm92_vm0, %v2957_v2 }
0x183d   :  { %2958 = vst.msk [vmem:[#allocation6] sm:$0xff] %vm92_vm0, %v2956_v19 }
0x183e   :  { %3503 = shalt.err (!%p3500_p9)
}
0x183f   :  { %2971 = dma.vmem_to_hbm [thread:$0]  %s2966_s3, 256, %s4224_s14, [#allocation5], %s3517_s16, %s3517_s16, %s3518_s17  }
0x1840   :  { %3514 = dma.done.wait [#allocation5], 256  }
0x1841   :  { %3515 = vsyncadd [#allocation5], 4294967040 }
0x1842   :  { %2975 = vsyncpa [#allocation4], 1 }
0x1843   :  { %2976 = vsyncpa [#allocation5], 1 }

</bundles_post_ra>
